<compile_context>
chip_gen: v5e
topology: v5e:2x2
jax: 0.10.0
libtpu: 0.0.40
codegen_flags: <defaults>
</compile_context>

<pallas_src>
import functools

import jax
import jax.numpy as jnp
from jax.experimental import pallas as pl
from jax.experimental.pallas import tpu as pltpu

H_IN, H1, H2, H_OUT = 768, 512, 16, 2
LANE = 128          # lane-padded width for the fc2/fc3 tail
NEG = -1e30         # softmax mask value for padded logit columns (f32 only!)


def _round_up(x, m):
    return (x + m - 1) // m * m


def _classifier_head_kernel(x_ref, w1_ref, wtail_ref, bias_ref, out_ref):
    # fc1 + ReLU  (dropout p=0.1 is identity in eval mode).
    # Activations arrive as f32 and are cast to bf16 in VMEM: cheaper than a
    # separate host-side cast pass (one HBM read instead of read+write+read).
    x = x_ref[...].astype(jnp.bfloat16)               # (TB, 768) bf16
    b1 = bias_ref[0:1, :]                             # (1, 512)  f32
    h = jnp.dot(x, w1_ref[...], preferred_element_type=jnp.float32) + b1
    h = jnp.maximum(h, 0.0)                           # (TB, 512) f32

    # fc2 + ReLU on a lane-dense 128-wide slab (columns >= 16 are zero)
    h = h.astype(jnp.bfloat16)
    w2 = wtail_ref[0:H1, :]                           # (512, 128) bf16
    b2 = bias_ref[1:2, 0:LANE]                        # (1, 128)   f32
    h = jnp.dot(h, w2, preferred_element_type=jnp.float32) + b2
    h = jnp.maximum(h, 0.0)                           # (TB, 128) f32, pad cols = 0

    # fc3 (padded columns get bias = -1e30 so they vanish in the softmax)
    h = h.astype(jnp.bfloat16)
    w3 = wtail_ref[H1:H1 + LANE, :]                   # (128, 128) bf16
    b3 = bias_ref[2:3, 0:LANE]                        # (1, 128)   f32
    logits = jnp.dot(h, w3, preferred_element_type=jnp.float32) + b3

    # LogSoftmax over the class dimension (must stay f32: -1e30 mask + reductions)
    m = jnp.max(logits, axis=-1, keepdims=True)
    lse = m + jnp.log(jnp.sum(jnp.exp(logits - m), axis=-1, keepdims=True))
    out_ref[...] = (logits[:, 0:H_OUT] - lse).astype(out_ref.dtype)


def pack_params(params):
    """One-time packing of the head weights into kernel-resident slabs.

    Call this once (e.g. at model-load time), not per forward call.
    """
    # bf16 weights: halves the dominant HBM->VMEM weight traffic.
    w1 = params["w1"].astype(jnp.bfloat16)                         # (768, 512)

    # Tail weights packed into one lane-dense bf16 slab (single DMA, resident).
    w2p = jnp.zeros((H1, LANE), jnp.bfloat16).at[:, :H2].set(
        params["w2"].astype(jnp.bfloat16))
    w3p = jnp.zeros((LANE, LANE), jnp.bfloat16).at[:H2, :H_OUT].set(
        params["w3"].astype(jnp.bfloat16))
    wtail = jnp.concatenate([w2p, w3p], axis=0)                    # (640, 128)

    # All biases packed into one small f32 slab (single DMA, resident).
    biases = jnp.zeros((8, H1), jnp.float32)
    biases = biases.at[0, :].set(params["b1"].reshape(-1))
    biases = biases.at[1, :H2].set(params["b2"].reshape(-1))
    biases = biases.at[2, :LANE].set(NEG)
    biases = biases.at[2, :H_OUT].set(params["b3"].reshape(-1))

    return {"w1": w1, "wtail": wtail, "biases": biases}


def _pick_tile(B, tb):
    """Batch tile: multiple of 16 (bf16 sublane packing), large by default,
    capped so large batches always give >= 2 grid steps (v7x megacore)."""
    tb = max(16, min(tb, _round_up(B, 16)))
    if B >= 512:
        tb = min(tb, _round_up(pl.cdiv(B, 2), 16))
    return tb


@functools.partial(jax.jit, static_argnames=("tb",))
def bert_classifier_head(cls_hs, packed, *, tb=1024):
    """cls_hs: [B, 768] float32 pooled [CLS]. packed: output of pack_params()."""
    B = cls_hs.shape[0]
    tb = _pick_tile(B, tb)
    grid = pl.cdiv(B, tb)          # partial last block; its OOB rows are never stored

    resident = lambda shape: pl.BlockSpec(shape, lambda i: (0, 0))

    return pl.pallas_call(
        _classifier_head_kernel,
        out_shape=jax.ShapeDtypeStruct((B, H_OUT), jnp.float32),
        grid_spec=pltpu.PrefetchScalarGridSpec(
            num_scalar_prefetch=0,
            grid=(grid,),
            in_specs=[
                pl.BlockSpec((tb, H_IN), lambda i: (i, 0)),   # f32 activation tile
                resident((H_IN, H1)),                          # w1 (bf16, VMEM-resident)
                resident((H1 + LANE, LANE)),                   # packed w2|w3 (bf16)
                resident((8, H1)),                             # packed biases (f32)
            ],
            out_specs=pl.BlockSpec((tb, H_OUT), lambda i: (i, 0)),
        ),
        compiler_params=pltpu.CompilerParams(
            dimension_semantics=("parallel",),     # megacore split on v7x
            vmem_limit_bytes=32 * 1024 * 1024,     # tb=1024 footprint ~10 MB: safe
        ),
    )(cls_hs, packed["w1"], packed["wtail"], packed["biases"])


def init_params(key):
    """Deterministic nn.Linear-style init: U(-1/sqrt(fan_in), 1/sqrt(fan_in))."""
    ks = jax.random.split(key, 6)

    def linear(kw, kb, fan_in, fan_out):
        bound = 1.0 / jnp.sqrt(float(fan_in))
        # stored as [in, out] so the kernel does x @ W (== x @ W_torch.T)
        w = jax.random.uniform(kw, (fan_in, fan_out), jnp.float32, -bound, bound)
        b = jax.random.uniform(kb, (1, fan_out), jnp.float32, -bound, bound)
        return w, b

    w1, b1 = linear(ks[0], ks[1], H_IN, H1)
    w2, b2 = linear(ks[2], ks[3], H1, H2)
    w3, b3 = linear(ks[4], ks[5], H2, H_OUT)
    return {"w1": w1, "b1": b1, "w2": w2, "b2": b2, "w3": w3, "b3": b3}


def _reference(cls_hs, p):
    """Pure-JAX reference mirroring the kernel's bf16 rounding of matmul inputs."""
    f32 = jnp.float32
    bf = lambda a: a.astype(jnp.bfloat16).astype(f32)
    dot = functools.partial(jnp.dot, precision=jax.lax.Precision.HIGHEST,
                            preferred_element_type=f32)
    h = jnp.maximum(dot(bf(cls_hs), bf(p["w1"])) + p["b1"], 0.0)
    h = jnp.maximum(dot(bf(h), bf(p["w2"])) + p["b2"], 0.0)
    logits = dot(bf(h), bf(p["w3"])) + p["b3"]
    return jax.nn.log_softmax(logits, axis=1)


if __name__ == "__main__":
    key = jax.random.PRNGKey(0)
    k_x, k_p = jax.random.split(key)

    params = init_params(k_p)
    packed = pack_params(params)            # one-time packing, outside the call path

    # Small batch (single grid step, partial block): the shape the module implies.
    B = 8
    cls_hs = jax.random.normal(k_x, (B, H_IN), jnp.float32)
    out = jax.block_until_ready(bert_classifier_head(cls_hs, packed))
    ref = _reference(cls_hs, params)
    assert out.shape == (B, H_OUT)
    assert jnp.allclose(out, ref, atol=5e-3, rtol=5e-3), \
        float(jnp.max(jnp.abs(out - ref)))

    # Larger batch: exercises the >=2-step "parallel" grid (v7x megacore path).
    B2 = 640
    cls_hs2 = jax.random.normal(jax.random.PRNGKey(1), (B2, H_IN), jnp.float32)
    out2 = jax.block_until_ready(bert_classifier_head(cls_hs2, packed))
    ref2 = _reference(cls_hs2, params)
    assert out2.shape == (B2, H_OUT)
    assert jnp.allclose(out2, ref2, atol=5e-3, rtol=5e-3), \
        float(jnp.max(jnp.abs(out2 - ref2)))

    print("KERNEL_OK")
</pallas_src>

<mosaic_0001>
module attributes {stable_mosaic.version = 11 : i64} {
  func.func @_classifier_head_kernel(%arg0: i32, %arg1: memref<16x768xf32, #tpu.memory_space<vmem>>, %arg2: memref<768x512xbf16, #tpu.memory_space<vmem>>, %arg3: memref<640x128xbf16, #tpu.memory_space<vmem>>, %arg4: memref<8x512xf32, #tpu.memory_space<vmem>>, %arg5: memref<16x2xf32, #tpu.memory_space<vmem>>) attributes {dimension_semantics = [#tpu.dimension_semantics<parallel>], iteration_bounds = array<i64: 1>, scalar_prefetch = 0 : i64, scratch_operands = 0 : i64, tpu.core_type = #tpu.core_type<tc>, window_params = [{transform_indices = @transform_0, window_bounds = array<i64: 16, 768>}, {pipeline_mode = #tpu.pipeline_mode<synchronous>, transform_indices = @transform_1, window_bounds = array<i64: 768, 512>}, {pipeline_mode = #tpu.pipeline_mode<synchronous>, transform_indices = @transform_2, window_bounds = array<i64: 640, 128>}, {pipeline_mode = #tpu.pipeline_mode<synchronous>, transform_indices = @transform_3, window_bounds = array<i64: 8, 512>}, {transform_indices = @transform_4, window_bounds = array<i64: 16, 2>}]} {
    %c0 = arith.constant 0 : index
    %c0_0 = arith.constant 0 : index
    %0 = vector.load %arg1[%c0, %c0_0] : memref<16x768xf32, #tpu.memory_space<vmem>>, vector<16x768xf32>
    %1 = arith.truncf %0 : vector<16x768xf32> to vector<16x768xbf16>
    %c0_1 = arith.constant 0 : index
    %c0_2 = arith.constant 0 : index
    %2 = vector.load %arg4[%c0_1, %c0_2] : memref<8x512xf32, #tpu.memory_space<vmem>>, vector<1x512xf32>
    %c0_3 = arith.constant 0 : index
    %c0_4 = arith.constant 0 : index
    %3 = vector.load %arg2[%c0_3, %c0_4] : memref<768x512xbf16, #tpu.memory_space<vmem>>, vector<768x512xbf16>
    %cst = arith.constant dense<0.000000e+00> : vector<16x512xf32>
    %4 = tpu.matmul %1, %3, %cst {dimension_numbers = #tpu.dot_dimension_numbers<[1], [0], [0], [1], [0, 0, 1, 1], [], []>} : vector<16x768xbf16>, vector<768x512xbf16>, vector<16x512xf32> -> vector<16x512xf32>
    %5 = vector.broadcast %2 : vector<1x512xf32> to vector<16x512xf32>
    %6 = arith.addf %4, %5 : vector<16x512xf32>
    %cst_5 = arith.constant 0.000000e+00 : f32
    %7 = vector.broadcast %cst_5 : f32 to vector<16x512xf32>
    %8 = arith.maximumf %6, %7 : vector<16x512xf32>
    %9 = arith.truncf %8 : vector<16x512xf32> to vector<16x512xbf16>
    %c0_6 = arith.constant 0 : index
    %c0_7 = arith.constant 0 : index
    %10 = vector.load %arg3[%c0_6, %c0_7] : memref<640x128xbf16, #tpu.memory_space<vmem>>, vector<512x128xbf16>
    %c1 = arith.constant 1 : index
    %c0_8 = arith.constant 0 : index
    %11 = vector.load %arg4[%c1, %c0_8] : memref<8x512xf32, #tpu.memory_space<vmem>>, vector<1x128xf32>
    %cst_9 = arith.constant dense<0.000000e+00> : vector<16x128xf32>
    %12 = tpu.matmul %9, %10, %cst_9 {dimension_numbers = #tpu.dot_dimension_numbers<[1], [0], [0], [1], [0, 0, 1, 1], [], []>} : vector<16x512xbf16>, vector<512x128xbf16>, vector<16x128xf32> -> vector<16x128xf32>
    %13 = vector.broadcast %11 : vector<1x128xf32> to vector<16x128xf32>
    %14 = arith.addf %12, %13 : vector<16x128xf32>
    %cst_10 = arith.constant 0.000000e+00 : f32
    %15 = vector.broadcast %cst_10 : f32 to vector<16x128xf32>
    %16 = arith.maximumf %14, %15 : vector<16x128xf32>
    %17 = arith.truncf %16 : vector<16x128xf32> to vector<16x128xbf16>
    %c512 = arith.constant 512 : index
    %c0_11 = arith.constant 0 : index
    %18 = vector.load %arg3[%c512, %c0_11] : memref<640x128xbf16, #tpu.memory_space<vmem>>, vector<128x128xbf16>
    %c2 = arith.constant 2 : index
    %c0_12 = arith.constant 0 : index
    %19 = vector.load %arg4[%c2, %c0_12] : memref<8x512xf32, #tpu.memory_space<vmem>>, vector<1x128xf32>
    %cst_13 = arith.constant dense<0.000000e+00> : vector<16x128xf32>
    %20 = tpu.matmul %17, %18, %cst_13 {dimension_numbers = #tpu.dot_dimension_numbers<[1], [0], [0], [1], [0, 0, 1, 1], [], []>} : vector<16x128xbf16>, vector<128x128xbf16>, vector<16x128xf32> -> vector<16x128xf32>
    %21 = vector.broadcast %19 : vector<1x128xf32> to vector<16x128xf32>
    %22 = arith.addf %20, %21 : vector<16x128xf32>
    %cst_14 = arith.constant dense<0xFF800000> : vector<16xf32>
    %23 = vector.multi_reduction <maximumf>, %22, %cst_14 [1] : vector<16x128xf32> to vector<16xf32>
    %24 = vector.shape_cast %23 : vector<16xf32> to vector<16x1xf32>
    %25 = vector.broadcast %24 : vector<16x1xf32> to vector<16x128xf32>
    %26 = arith.subf %22, %25 : vector<16x128xf32>
    %27 = math.exp %26 : vector<16x128xf32>
    %cst_15 = arith.constant dense<0.000000e+00> : vector<16xf32>
    %28 = vector.multi_reduction <add>, %27, %cst_15 [1] : vector<16x128xf32> to vector<16xf32>
    %29 = vector.shape_cast %28 : vector<16xf32> to vector<16x1xf32>
    %30 = math.log %29 : vector<16x1xf32>
    %31 = arith.addf %24, %30 : vector<16x1xf32>
    %32 = vector.extract_strided_slice %22 {offsets = [0, 0], sizes = [16, 2], strides = [1, 1]} : vector<16x128xf32> to vector<16x2xf32>
    %33 = vector.broadcast %31 : vector<16x1xf32> to vector<16x2xf32>
    %34 = arith.subf %32, %33 : vector<16x2xf32>
    %c0_16 = arith.constant 0 : index
    %c0_17 = arith.constant 0 : index
    %35 = vector.load %arg5[%c0_16, %c0_17] : memref<16x2xf32, #tpu.memory_space<vmem>>, vector<16x2xf32>
    tpu.vector_store %arg5[%c0_16, %c0_17], %34 {strides = array<i32>} : memref<16x2xf32, #tpu.memory_space<vmem>>, vector<16x2xf32>,
    return
  }
  func.func @transform_0(%arg0: i32) -> (i32, i32) {
    %c0_i32 = arith.constant 0 : i32
    %c0_i32_0 = arith.constant 0 : i32
    return %arg0, %c0_i32 : i32, i32
  }
  func.func @transform_1(%arg0: i32) -> (i32, i32) {
    %c0_i32 = arith.constant 0 : i32
    %c0_i32_0 = arith.constant 0 : i32
    %c0_i32_1 = arith.constant 0 : i32
    return %c0_i32, %c0_i32_0 : i32, i32
  }
  func.func @transform_2(%arg0: i32) -> (i32, i32) {
    %c0_i32 = arith.constant 0 : i32
    %c0_i32_0 = arith.constant 0 : i32
    %c0_i32_1 = arith.constant 0 : i32
    return %c0_i32, %c0_i32_0 : i32, i32
  }
  func.func @transform_3(%arg0: i32) -> (i32, i32) {
    %c0_i32 = arith.constant 0 : i32
    %c0_i32_0 = arith.constant 0 : i32
    %c0_i32_1 = arith.constant 0 : i32
    return %c0_i32, %c0_i32_0 : i32, i32
  }
  func.func @transform_4(%arg0: i32) -> (i32, i32) {
    %c0_i32 = arith.constant 0 : i32
    %c0_i32_0 = arith.constant 0 : i32
    return %arg0, %c0_i32 : i32, i32
  }
}

</mosaic_0001>

<bundles_post_ra>
// kernel: bert_classifier_head.1
= control target key start
LH: loop header
LB: loop body
LE: loop exit
PB: predicated region body
PF: predicated region fallthrough
CT: control target
= control target key end

     0   :  { %9 = vsyncpa [#allocation3], 0  ;;  %s3442_s0 = inlined_call_operand.hbm [shape: f32[8,768], index: 0, kind: input, shape index: {}]   ;;  %s3443_s1 = inlined_call_operand.hbm [shape: bf16[768,512], index: 1, kind: input, shape index: {}]   ;;  %s3444_s2 = inlined_call_operand.hbm [shape: bf16[640,128], index: 2, kind: input, shape index: {}]   ;;  %s3445_s3 = inlined_call_operand.hbm [shape: f32[8,512], index: 3, kind: input, shape index: {}]   ;;  %s3446_s4 = inlined_call_operand.vmem [shape: f32[8,2], index: 4, kind: output, shape index: {}]  }
   0x1   :  { %10 = vsyncpa [#allocation5], 0 }
   0x2   :  { %11 = vsyncpa [#allocation8], 0  ;;  %s29_s17 = sshll.u32 %s3443_s1, 4  ;;  %s30_s17 = int_to_ptr.hbm [resolvable:$true] %s29_s17 }
   0x3   :  { %15 = vsyncadd [#allocation3], 768  ;;  %s3350_s18 = smov [#allocation4]   ;;  %s16_s22 = sshll.u32 %s3442_s0, 4  ;;  %s17_s22 = int_to_ptr.hbm [resolvable:$true] %s16_s22 }
   0x4   :  { %s31_s19 = sshll.u32 %s3350_s18, 4  ;;  %s3351_s23 = smov 256   ;;  %s32_s19 = int_to_ptr.vmem [resolvable:$true] %s31_s19 }
   0x5   :  { %s3352_s24 = smov 16   ;;  %s3353_s25 = smov [#allocation2]  }
   0x6   :  { %37 = dma.hbm_to_vmem [thread:$0]  %s30_s17, 24576, %s32_s19, [#allocation5], %s3351_s23, %s3351_s23, %s3352_s24  }
   0x7   :  { %s18_s26 = sshll.u32 %s3353_s25, 4  ;;  %s3354_s27 = smov 768   ;;  %s19_s26 = int_to_ptr.vmem [resolvable:$true] %s18_s26 }
   0x8   :  { %s3355_s28 = smov 48   ;;  %s42_s30 = sshll.u32 %s3444_s2, 4  ;;  %s43_s30 = int_to_ptr.hbm [resolvable:$true] %s42_s30 }
   0x9   :  { %24 = dma.hbm_to_vmem [thread:$0]  %s17_s22, 768, %s19_s26, [#allocation3], %s3354_s27, %s3354_s27, %s3355_s28  }
   0xa   :  { %s3356_s5 = smov [#allocation6]   ;;  %s56_s8 = sshll.u32 %s3445_s3, 4  ;;  %s57_s8 = int_to_ptr.hbm [resolvable:$true] %s56_s8 }
   0xb   :  { %s44_s6 = sshll.u32 %s3356_s5, 4  ;;  %s3357_s9 = smov 64   ;;  %s45_s6 = int_to_ptr.vmem [resolvable:$true] %s44_s6 }
   0xc   :  { %s3358_s10 = smov 4   ;;  %s3359_s11 = smov [#allocation7]  }
   0xd   :  { %50 = dma.hbm_to_vmem [thread:$0]  %s43_s30, 5120, %s45_s6, [#allocation5], %s3357_s9, %s3357_s9, %s3358_s10  }
   0xe   :  { %s58_s12 = sshll.u32 %s3359_s11, 4  ;;  %s59_s12 = int_to_ptr.vmem [resolvable:$true] %s58_s12 }
   0xf   :  { %61 = dma.hbm_to_vmem [thread:$0]  %s57_s8, 512, %s59_s12, [#allocation8]  }
  0x10   :  { %3344 = dma.done.wait [#allocation3], 1536  }
  0x11   :  { %3345 = vsyncadd [#allocation3], 4294965760 }
  0x12   :  { %3346 = dma.done.wait [#allocation5], 29696  }
  0x13   :  { %3347 = vsyncadd [#allocation5], 4294937600 }
  0x14   :  { %3348 = dma.done.wait [#allocation8], 512  }
  0x15   :  { %3349 = vsyncadd [#allocation8], 4294966784  ;;  %v2184_v0 = vld [vmem:[#allocation4 + $0xe0] sm:$0xf]  ;;  %v3028_v1 = vld [vmem:[#allocation4 + $0xec] sm:$0xf0] }
  0x16   :  { %v2312_v2 = vld [vmem:[#allocation4 + $0x1e0] sm:$0xf]  ;;  %v2185_v3 = vor.u32 %v3028_v1, %v2184_v0  ;;  %v3060_v4 = vld [vmem:[#allocation4 + $0x1ec] sm:$0xf0]  ;;  %vm2023_vm0 = vcmask 15360  }
  0x17   :  { %v2440_v5 = vld [vmem:[#allocation4 + $0x2e0] sm:$0xf]  ;;  %v3092_v6 = vld [vmem:[#allocation4 + $0x2ec] sm:$0xf0]  ;;  %v2313_v7 = vor.u32 %v3060_v4, %v2312_v2 }
  0x18   :  { %v2441_v8 = vor.u32 %v3092_v6, %v2440_v5  ;;  %v2568_v9 = vld [vmem:[#allocation4 + $0x3e0] sm:$0xf]  ;;  %v3124_v10 = vld [vmem:[#allocation4 + $0x3ec] sm:$0xf0]  ;;  %1258 = vmatpush.bf16.msra.mxu0 %v2185_v3 }
  0x19   :  { %v2168_v11 = vld [vmem:[#allocation4 + $0xc0] sm:$0xf]  ;;  %v2569_v12 = vor.u32 %v3124_v10, %v2568_v9  ;;  %v3024_v13 = vld [vmem:[#allocation4 + $0xcc] sm:$0xf0]  ;;  %1272 = vmatpush.bf16.msra.mxu1 %v2313_v7 }
  0x1a   :  { %v2296_v14 = vld [vmem:[#allocation4 + $0x1c0] sm:$0xf]  ;;  %v3056_v15 = vld [vmem:[#allocation4 + $0x1cc] sm:$0xf0]  ;;  %1286 = vmatpush.bf16.msra.mxu2 %v2441_v8  ;;  %v2169_v16 = vor.u32 %v3024_v13, %v2168_v11 }
  0x1b   :  { %v2297_v17 = vor.u32 %v3056_v15, %v2296_v14  ;;  %v2424_v18 = vld [vmem:[#allocation4 + $0x2c0] sm:$0xf]  ;;  %v3088_v19 = vld [vmem:[#allocation4 + $0x2cc] sm:$0xf0]  ;;  %1300 = vmatpush.bf16.msra.mxu3 %v2569_v12 }
  0x1c   :  { %v2552_v20 = vld [vmem:[#allocation4 + $0x3c0] sm:$0xf]  ;;  %v2425_v21 = vor.u32 %v3088_v19, %v2424_v18  ;;  %v3120_v22 = vld [vmem:[#allocation4 + $0x3cc] sm:$0xf0]  ;;  %1259 = vmatpush.bf16.msra.mxu0 %v2169_v16 }
  0x1d   :  { %v2152_v23 = vld [vmem:[#allocation4 + $0xa0] sm:$0xf]  ;;  %v3020_v24 = vld [vmem:[#allocation4 + $0xac] sm:$0xf0]  ;;  %v2553_v25 = vor.u32 %v3120_v22, %v2552_v20  ;;  %1273 = vmatpush.bf16.msra.mxu1 %v2297_v17 }
  0x1e   :  { %v2280_v26 = vld [vmem:[#allocation4 + $0x1a0] sm:$0xf]  ;;  %v3052_v27 = vld [vmem:[#allocation4 + $0x1ac] sm:$0xf0]  ;;  %v2153_v29 = vor.u32 %v3020_v24, %v2152_v23  ;;  %1287 = vmatpush.bf16.msra.mxu2 %v2425_v21 }
  0x1f   :  { %v2408_v28 = vld [vmem:[#allocation4 + $0x2a0] sm:$0xf]  ;;  %v3084_v30 = vld [vmem:[#allocation4 + $0x2ac] sm:$0xf0]  ;;  %v2281_v33 = vor.u32 %v3052_v27, %v2280_v26  ;;  %1301 = vmatpush.bf16.msra.mxu3 %v2553_v25 }
  0x20   :  { %v2536_v31 = vld [vmem:[#allocation4 + $0x3a0] sm:$0xf]  ;;  %v3116_v32 = vld [vmem:[#allocation4 + $0x3ac] sm:$0xf0]  ;;  %v2409_v34 = vor.u32 %v3084_v30, %v2408_v28  ;;  %1260 = vmatpush.bf16.msra.mxu0 %v2153_v29 }
  0x21   :  { %v2136_v35 = vld [vmem:[#allocation4 + $0x80] sm:$0xf]  ;;  %v3016_v36 = vld [vmem:[#allocation4 + $0x8c] sm:$0xf0]  ;;  %v2537_v38 = vor.u32 %v3116_v32, %v2536_v31  ;;  %1274 = vmatpush.bf16.msra.mxu1 %v2281_v33  ;;  %v3026_v33 = vld [vmem:[#allocation4 + $0xe4] sm:$0xf] }
  0x22   :  { %v2264_v37 = vld [vmem:[#allocation4 + $0x180] sm:$0xf]  ;;  %v3048_v39 = vld [vmem:[#allocation4 + $0x18c] sm:$0xf0]  ;;  %v2137_v44 = vor.u32 %v3016_v36, %v2136_v35  ;;  %1288 = vmatpush.bf16.msra.mxu2 %v2409_v34  ;;  %v2186_v34 = vld [vmem:[#allocation4 + $0xf0] sm:$0xf0] }
  0x23   :  { %v2392_v40 = vld [vmem:[#allocation4 + $0x280] sm:$0xf]  ;;  %v3080_v41 = vld [vmem:[#allocation4 + $0x28c] sm:$0xf0]  ;;  %v2265_v45 = vor.u32 %v3048_v39, %v2264_v37  ;;  %1302 = vmatpush.bf16.msra.mxu3 %v2537_v38  ;;  %v3058_v37 = vld [vmem:[#allocation4 + $0x1e4] sm:$0xf] }
  0x24   :  { %v2520_v42 = vld [vmem:[#allocation4 + $0x380] sm:$0xf]  ;;  %v3112_v43 = vld [vmem:[#allocation4 + $0x38c] sm:$0xf0]  ;;  %v2393_v46 = vor.u32 %v3080_v41, %v2392_v40  ;;  %1261 = vmatpush.bf16.msra.mxu0 %v2137_v44  ;;  %v2314_v38 = vld [vmem:[#allocation4 + $0x1f0] sm:$0xf0] }
  0x25   :  { %v2120_v47 = vld [vmem:[#allocation4 + $0x60] sm:$0xf]  ;;  %v3012_v48 = vld [vmem:[#allocation4 + $0x6c] sm:$0xf0]  ;;  %v2521_v50 = vor.u32 %v3112_v43, %v2520_v42  ;;  %1275 = vmatpush.bf16.msra.mxu1 %v2265_v45  ;;  %v2189_v43 = vor.u32 %v3026_v33, %v2186_v34  ;;  %v2122_v33 = vld [vmem:[#allocation4 + $0x70] sm:$0xf0] }
  0x26   :  { %v2248_v49 = vld [vmem:[#allocation4 + $0x160] sm:$0xf]  ;;  %v3044_v51 = vld [vmem:[#allocation4 + $0x16c] sm:$0xf0]  ;;  %v2121_v56 = vor.u32 %v3012_v48, %v2120_v47  ;;  %1289 = vmatpush.bf16.msra.mxu2 %v2393_v46  ;;  %v2317_v47 = vor.u32 %v3058_v37, %v2314_v38  ;;  %v3022_v48 = vld [vmem:[#allocation4 + $0xc4] sm:$0xf] }
  0x27   :  { %v2376_v52 = vld [vmem:[#allocation4 + $0x260] sm:$0xf]  ;;  %v3076_v53 = vld [vmem:[#allocation4 + $0x26c] sm:$0xf0]  ;;  %v2249_v57 = vor.u32 %v3044_v51, %v2248_v49  ;;  %1303 = vmatpush.bf16.msra.mxu3 %v2521_v50  ;;  %v2170_v49 = vld [vmem:[#allocation4 + $0xd0] sm:$0xf0] }
  0x28   :  { %v2504_v54 = vld [vmem:[#allocation4 + $0x360] sm:$0xf]  ;;  %v3108_v55 = vld [vmem:[#allocation4 + $0x36c] sm:$0xf0]  ;;  %v2377_v58 = vor.u32 %v3076_v53, %v2376_v52  ;;  %1262 = vmatpush.bf16.msra.mxu0 %v2121_v56  ;;  %v3054_v50 = vld [vmem:[#allocation4 + $0x1c4] sm:$0xf] }
  0x29   :  { %v2104_v59 = vld [vmem:[#allocation4 + $0x40] sm:$0xf]  ;;  %v3008_v60 = vld [vmem:[#allocation4 + $0x4c] sm:$0xf0]  ;;  %v2505_v62 = vor.u32 %v3108_v55, %v2504_v54  ;;  %1276 = vmatpush.bf16.msra.mxu1 %v2249_v57  ;;  %v2298_v51 = vld [vmem:[#allocation4 + $0x1d0] sm:$0xf0] }
  0x2a   :  { %v2232_v61 = vld [vmem:[#allocation4 + $0x140] sm:$0xf]  ;;  %v3040_v63 = vld [vmem:[#allocation4 + $0x14c] sm:$0xf0]  ;;  %v2105_v4 = vor.u32 %v3008_v60, %v2104_v59  ;;  %1290 = vmatpush.bf16.msra.mxu2 %v2377_v58  ;;  %v2173_v59 = vor.u32 %v3022_v48, %v2170_v49  ;;  %v3042_v34 = vld [vmem:[#allocation4 + $0x164] sm:$0xf] }
  0x2b   :  { %v2360_v0 = vld [vmem:[#allocation4 + $0x240] sm:$0xf]  ;;  %v3072_v1 = vld [vmem:[#allocation4 + $0x24c] sm:$0xf0]  ;;  %v2233_v5 = vor.u32 %v3040_v63, %v2232_v61  ;;  %1304 = vmatpush.bf16.msra.mxu3 %v2505_v62  ;;  %v3018_v62 = vld [vmem:[#allocation4 + $0xa4] sm:$0xf]  ;;  %v2301_v63 = vor.u32 %v3054_v50, %v2298_v51 }
  0x2c   :  { %v2488_v2 = vld [vmem:[#allocation4 + $0x340] sm:$0xf]  ;;  %v3104_v3 = vld [vmem:[#allocation4 + $0x34c] sm:$0xf0]  ;;  %v2361_v6 = vor.u32 %v3072_v1, %v2360_v0  ;;  %1263 = vmatpush.bf16.msra.mxu0 %v2105_v4  ;;  %v2154_v0 = vld [vmem:[#allocation4 + $0xb0] sm:$0xf0] }
  0x2d   :  { %v2088_v7 = vld [vmem:[#allocation4 + $0x20] sm:$0xf]  ;;  %v3004_v8 = vld [vmem:[#allocation4 + $0x2c] sm:$0xf0]  ;;  %v2489_v10 = vor.u32 %v3104_v3, %v2488_v2  ;;  %1277 = vmatpush.bf16.msra.mxu1 %v2233_v5  ;;  %v79_v1 = vld [vmem:[#allocation2 + $0x8] sm:$0xff] }
  0x2e   :  { %v2216_v9 = vld [vmem:[#allocation4 + $0x120] sm:$0xf]  ;;  %v3036_v11 = vld [vmem:[#allocation4 + $0x12c] sm:$0xf0]  ;;  %v2089_v16 = vor.u32 %v3004_v8, %v2088_v7  ;;  %1291 = vmatpush.bf16.msra.mxu2 %v2361_v6  ;;  %v85_v2 = vld [vmem:[#allocation2 + $0x38] sm:$0xff] }
  0x2f   :  { %v2344_v12 = vld [vmem:[#allocation4 + $0x220] sm:$0xf]  ;;  %v3068_v13 = vld [vmem:[#allocation4 + $0x22c] sm:$0xf0]  ;;  %v2217_v19 = vor.u32 %v3036_v11, %v2216_v9  ;;  %1305 = vmatpush.bf16.msra.mxu3 %v2489_v10  ;;  %v3050_v3 = vld [vmem:[#allocation4 + $0x1a4] sm:$0xf]  ;;  %v3400_v6 = vpack.c.bf16 %v85_v2, %v79_v1 }
  0x30   :  { %v2472_v14 = vld [vmem:[#allocation4 + $0x320] sm:$0xf]  ;;  %v3100_v15 = vld [vmem:[#allocation4 + $0x32c] sm:$0xf0]  ;;  %v2345_v20 = vor.u32 %v3068_v13, %v2344_v12  ;;  %1264 = vmatpush.bf16.msra.mxu0 %v2089_v16  ;;  %v2282_v4 = vld [vmem:[#allocation4 + $0x1b0] sm:$0xf0]  ;;  %v2157_v12 = vor.u32 %v3018_v62, %v2154_v0 }
  0x31   :  { %v2072_v17 = vld [vmem:[#allocation4] sm:$0xf]  ;;  %v3000_v18 = vld [vmem:[#allocation4 + $0xc] sm:$0xf0]  ;;  %v2473_v24 = vor.u32 %v3100_v15, %v2472_v14  ;;  %1278 = vmatpush.bf16.msra.mxu1 %v2217_v19  ;;  %v3014_v13 = vld [vmem:[#allocation4 + $0x84] sm:$0xf]  ;;  %v2285_v16 = vor.u32 %v3050_v3, %v2282_v4 }
  0x32   :  { %v2200_v21 = vld [vmem:[#allocation4 + $0x100] sm:$0xf]  ;;  %v3032_v22 = vld [vmem:[#allocation4 + $0x10c] sm:$0xf0]  ;;  %v2073_v31 = vor.u32 %v3000_v18, %v2072_v17  ;;  %1292 = vmatpush.bf16.msra.mxu2 %v2345_v20  ;;  %v2138_v14 = vld [vmem:[#allocation4 + $0x90] sm:$0xf0] }
  0x33   :  { %v2328_v23 = vld [vmem:[#allocation4 + $0x200] sm:$0xf]  ;;  %v3064_v25 = vld [vmem:[#allocation4 + $0x20c] sm:$0xf0]  ;;  %v2201_v35 = vor.u32 %v3032_v22, %v2200_v21  ;;  %1306 = vmatpush.bf16.msra.mxu3 %v2473_v24  ;;  %v81_v18 = vld [vmem:[#allocation2 + $0x18] sm:$0xff] }
  0x34   :  { %v2456_v26 = vld [vmem:[#allocation4 + $0x300] sm:$0xf]  ;;  %v3096_v27 = vld [vmem:[#allocation4 + $0x30c] sm:$0xf0]  ;;  %v2329_v36 = vor.u32 %v3064_v25, %v2328_v23  ;;  %1265 = vmatpush.bf16.msra.mxu0 %v2073_v31  ;;  %v87_v19 = vld [vmem:[#allocation2 + $0x48] sm:$0xff] }
  0x35   :  { %v2696_v28 = vld [vmem:[#allocation4 + $0x4e0] sm:$0xf]  ;;  %v3156_v29 = vld [vmem:[#allocation4 + $0x4ec] sm:$0xf0]  ;;  %v2457_v39 = vor.u32 %v3096_v27, %v2456_v26  ;;  %1279 = vmatpush.bf16.msra.mxu1 %v2201_v35  ;;  %v3046_v20 = vld [vmem:[#allocation4 + $0x184] sm:$0xf]  ;;  %v3405_v23 = vpack.c.bf16 %v87_v19, %v81_v18  ;;  %v2141_v26 = vor.u32 %v3014_v13, %v2138_v14 }
  0x36   :  { %v2824_v30 = vld [vmem:[#allocation4 + $0x5e0] sm:$0xf]  ;;  %v3188_v32 = vld [vmem:[#allocation4 + $0x5ec] sm:$0xf0]  ;;  %v2697_v40 = vor.u32 %v3156_v29, %v2696_v28  ;;  %1293 = vmatpush.bf16.msra.mxu2 %v2329_v36  ;;  %v2266_v21 = vld [vmem:[#allocation4 + $0x190] sm:$0xf0] }
  0x37   :  { %v2680_v41 = vld [vmem:[#allocation4 + $0x4c0] sm:$0xf]  ;;  %v2825_v42 = vor.u32 %v3188_v32, %v2824_v30  ;;  %v3152_v44 = vld [vmem:[#allocation4 + $0x4cc] sm:$0xf0]  ;;  %1307 = vmatpush.bf16.msra.mxu3 %v2457_v39  ;;  %v2269_v30 = vor.u32 %v3046_v20, %v2266_v21  ;;  %v3010_v32 = vld [vmem:[#allocation4 + $0x64] sm:$0xf] }
  0x38   :  { %v2808_v45 = vld [vmem:[#allocation4 + $0x5c0] sm:$0xf]  ;;  %v3184_v46 = vld [vmem:[#allocation4 + $0x5cc] sm:$0xf0]  ;;  %1314 = vmatpush.bf16.msrb.mxu0 %v2697_v40  ;;  %v2681_v54 = vor.u32 %v3152_v44, %v2680_v41  ;;  %1280 = vmatmul.bf16.vlgmr.msra.gmra.mxu1 %v3400_v6  ;;  %v2250_v35 = vld [vmem:[#allocation4 + $0x170] sm:$0xf0]  ;;  %v2125_v38 = vor.u32 %v3010_v32, %v2122_v33 }
  0x39   :  { %v78_v52 = vld [vmem:[#allocation2] sm:$0xff]  ;;  %v84_v53 = vld [vmem:[#allocation2 + $0x30] sm:$0xff]  ;;  %1328 = vmatpush.bf16.msrb.mxu1 %v2825_v42  ;;  %v2809_v58 = vor.u32 %v3184_v46, %v2808_v45  ;;  %v2253_v42 = vor.u32 %v3042_v34, %v2250_v35 }
  0x3a   :  { %v2664_v55 = vld [vmem:[#allocation4 + $0x4a0] sm:$0xf]  ;;  %v3148_v56 = vld [vmem:[#allocation4 + $0x4ac] sm:$0xf0]  ;;  %v3397_v57 = vpack.c.bf16 %v84_v53, %v78_v52  ;;  %1342 = vmatpush.bf16.msrb.mxu2 %v2189_v43  ;;  %1308 = vmatmul.bf16.vlgmr.msra.gmra.mxu3 %v3405_v23  ;;  %v3006_v44 = vld [vmem:[#allocation4 + $0x44] sm:$0xf] }
  0x3b   :  { %v2792_v60 = vld [vmem:[#allocation4 + $0x5a0] sm:$0xf]  ;;  %v3180_v61 = vld [vmem:[#allocation4 + $0x5ac] sm:$0xf0]  ;;  %1356 = vmatpush.bf16.msrb.mxu3 %v2317_v47  ;;  %v2665_v7 = vor.u32 %v3148_v56, %v2664_v55  ;;  %v2106_v45 = vld [vmem:[#allocation4 + $0x50] sm:$0xf0] }
  0x3c   :  { %1266 = vmatmul.bf16.vlgmr.msra.gmra.mxu0 %v3397_v57  ;;  %v2648_v5 = vld [vmem:[#allocation4 + $0x480] sm:$0xf]  ;;  %v3144_v8 = vld [vmem:[#allocation4 + $0x48c] sm:$0xf0]  ;;  %v2793_v11 = vor.u32 %v3180_v61, %v2792_v60  ;;  %v3038_v46 = vld [vmem:[#allocation4 + $0x144] sm:$0xf]  ;;  %v2109_v50 = vor.u32 %v3006_v44, %v2106_v45 }
  0x3d   :  { %1315 = vmatpush.bf16.msrb.mxu0 %v2681_v54  ;;  %v2776_v9 = vld [vmem:[#allocation4 + $0x580] sm:$0xf]  ;;  %v3176_v10 = vld [vmem:[#allocation4 + $0x58c] sm:$0xf0]  ;;  %1329 = vmatpush.bf16.msrb.mxu1 %v2809_v58  ;;  %v2649_v24 = vor.u32 %v3144_v8, %v2648_v5  ;;  %v2234_v47 = vld [vmem:[#allocation4 + $0x150] sm:$0xf0] }
  0x3e   :  { %1343 = vmatpush.bf16.msrb.mxu2 %v2173_v59  ;;  %v80_v15 = vld [vmem:[#allocation2 + $0x10] sm:$0xff]  ;;  %v86_v17 = vld [vmem:[#allocation2 + $0x40] sm:$0xff]  ;;  %v2777_v25 = vor.u32 %v3176_v10, %v2776_v9  ;;  %v2237_v54 = vor.u32 %v3038_v46, %v2234_v47 }
  0x3f   :  { %1357 = vmatpush.bf16.msrb.mxu3 %v2301_v63  ;;  %v3403_v22 = vpack.c.bf16 %v86_v17, %v80_v15  ;;  %v2632_v27 = vld [vmem:[#allocation4 + $0x460] sm:$0xf]  ;;  %v3140_v28 = vld [vmem:[#allocation4 + $0x46c] sm:$0xf0]  ;;  %v3002_v56 = vld [vmem:[#allocation4 + $0x24] sm:$0xf] }
  0x40   :  { %v2760_v29 = vld [vmem:[#allocation4 + $0x560] sm:$0xf]  ;;  %v3172_v31 = vld [vmem:[#allocation4 + $0x56c] sm:$0xf0]  ;;  %v2633_v36 = vor.u32 %v3140_v28, %v2632_v27  ;;  %v2090_v58 = vld [vmem:[#allocation4 + $0x30] sm:$0xf0] }
  0x41   :  { %1316 = vmatpush.bf16.msrb.mxu0 %v2665_v7  ;;  %1330 = vmatpush.bf16.msrb.mxu1 %v2793_v11  ;;  %v2761_v37 = vor.u32 %v3172_v31, %v2760_v29  ;;  %v2616_v39 = vld [vmem:[#allocation4 + $0x440] sm:$0xf]  ;;  %v3136_v40 = vld [vmem:[#allocation4 + $0x44c] sm:$0xf0]  ;;  %v3034_v59 = vld [vmem:[#allocation4 + $0x124] sm:$0xf]  ;;  %v2093_v2 = vor.u32 %v3002_v56, %v2090_v58 }
  0x42   :  { %1344 = vmatpush.bf16.msrb.mxu2 %v2157_v12  ;;  %v2744_v41 = vld [vmem:[#allocation4 + $0x540] sm:$0xf]  ;;  %v3168_v43 = vld [vmem:[#allocation4 + $0x54c] sm:$0xf0]  ;;  %v2617_v48 = vor.u32 %v3136_v40, %v2616_v39  ;;  %v2218_v60 = vld [vmem:[#allocation4 + $0x130] sm:$0xf0] }
  0x43   :  { %1358 = vmatpush.bf16.msrb.mxu3 %v2285_v16  ;;  %1294 = vmatmul.bf16.vlgmr.msra.gmra.mxu2 %v3403_v22  ;;  %v2745_v49 = vor.u32 %v3168_v43, %v2744_v41  ;;  %v2600_v51 = vld [vmem:[#allocation4 + $0x420] sm:$0xf]  ;;  %v3132_v52 = vld [vmem:[#allocation4 + $0x42c] sm:$0xf0]  ;;  %v2998_v4 = vld [vmem:[#allocation4 + $0x4] sm:$0xf]  ;;  %v2221_v7 = vor.u32 %v3034_v59, %v2218_v60 }
  0x44   :  { %v2728_v53 = vld [vmem:[#allocation4 + $0x520] sm:$0xf]  ;;  %v3164_v55 = vld [vmem:[#allocation4 + $0x52c] sm:$0xf0]  ;;  %v2601_v61 = vor.u32 %v3132_v52, %v2600_v51  ;;  %v2074_v5 = vld [vmem:[#allocation4 + $0x10] sm:$0xf0] }
  0x45   :  { %1317 = vmatpush.bf16.msrb.mxu0 %v2649_v24  ;;  %1331 = vmatpush.bf16.msrb.mxu1 %v2777_v25  ;;  %v2584_v62 = vld [vmem:[#allocation4 + $0x400] sm:$0xf]  ;;  %v3128_v63 = vld [vmem:[#allocation4 + $0x40c] sm:$0xf0]  ;;  %v2729_v1 = vor.u32 %v3164_v55, %v2728_v53  ;;  %v3030_v8 = vld [vmem:[#allocation4 + $0x104] sm:$0xf]  ;;  %v2077_v19 = vor.u32 %v2998_v4, %v2074_v5 }
  0x46   :  { %1345 = vmatpush.bf16.msrb.mxu2 %v2141_v26  ;;  %v2712_v0 = vld [vmem:[#allocation4 + $0x500] sm:$0xf]  ;;  %v3160_v3 = vld [vmem:[#allocation4 + $0x50c] sm:$0xf0]  ;;  %v2202_v9 = vld [vmem:[#allocation4 + $0x110] sm:$0xf0]  ;;  %v2585_v14 = vor.u32 %v3128_v63, %v2584_v62 }
  0x47   :  { %1359 = vmatpush.bf16.msrb.mxu3 %v2269_v30  ;;  %v3090_v10 = vld [vmem:[#allocation4 + $0x2e4] sm:$0xf]  ;;  %v2442_v11 = vld [vmem:[#allocation4 + $0x2f0] sm:$0xf0]  ;;  %v2713_v18 = vor.u32 %v3160_v3, %v2712_v0  ;;  %v2205_v25 = vor.u32 %v3030_v8, %v2202_v9  ;;  %v83_v27 = vld [vmem:[#allocation2 + $0x28] sm:$0xff] }
  0x48   :  { %v3122_v12 = vld [vmem:[#allocation4 + $0x3e4] sm:$0xf]  ;;  %v2570_v13 = vld [vmem:[#allocation4 + $0x3f0] sm:$0xf0]  ;;  %v2445_v26 = vor.u32 %v3090_v10, %v2442_v11  ;;  %v89_v28 = vld [vmem:[#allocation2 + $0x58] sm:$0xff] }
  0x49   :  { %1318 = vmatpush.bf16.msrb.mxu0 %v2633_v36  ;;  %1332 = vmatpush.bf16.msrb.mxu1 %v2761_v37  ;;  %v3154_v15 = vld [vmem:[#allocation4 + $0x4e4] sm:$0xf]  ;;  %v2698_v16 = vld [vmem:[#allocation4 + $0x4f0] sm:$0xf0]  ;;  %v2573_v29 = vor.u32 %v3122_v12, %v2570_v13  ;;  %v3411_v39 = vpack.c.bf16 %v89_v28, %v83_v27 }
  0x4a   :  { %1346 = vmatpush.bf16.msrb.mxu2 %v2125_v38  ;;  %v3186_v17 = vld [vmem:[#allocation4 + $0x5e4] sm:$0xf]  ;;  %v2826_v20 = vld [vmem:[#allocation4 + $0x5f0] sm:$0xf0]  ;;  %v2701_v30 = vor.u32 %v3154_v15, %v2698_v16 }
  0x4b   :  { %1360 = vmatpush.bf16.msrb.mxu3 %v2253_v42  ;;  %v82_v21 = vld [vmem:[#allocation2 + $0x20] sm:$0xff]  ;;  %v88_v24 = vld [vmem:[#allocation2 + $0x50] sm:$0xff]  ;;  %v2829_v34 = vor.u32 %v3186_v17, %v2826_v20 }
  0x4c   :  { %v3086_v31 = vld [vmem:[#allocation4 + $0x2c4] sm:$0xf]  ;;  %v2426_v32 = vld [vmem:[#allocation4 + $0x2d0] sm:$0xf0]  ;;  %v3409_v35 = vpack.c.bf16 %v88_v24, %v82_v21 }
  0x4d   :  { %1319 = vmatpush.bf16.msrb.mxu0 %v2617_v48  ;;  %1333 = vmatpush.bf16.msrb.mxu1 %v2745_v49  ;;  %v3118_v33 = vld [vmem:[#allocation4 + $0x3c4] sm:$0xf]  ;;  %v2554_v36 = vld [vmem:[#allocation4 + $0x3d0] sm:$0xf0]  ;;  %v2429_v42 = vor.u32 %v3086_v31, %v2426_v32 }
  0x4e   :  { %1347 = vmatpush.bf16.msrb.mxu2 %v2109_v50  ;;  %v3150_v37 = vld [vmem:[#allocation4 + $0x4c4] sm:$0xf]  ;;  %v2682_v38 = vld [vmem:[#allocation4 + $0x4d0] sm:$0xf0]  ;;  %v2557_v43 = vor.u32 %v3118_v33, %v2554_v36 }
  0x4f   :  { %1361 = vmatpush.bf16.msrb.mxu3 %v2237_v54  ;;  %v3182_v40 = vld [vmem:[#allocation4 + $0x5c4] sm:$0xf]  ;;  %v2810_v41 = vld [vmem:[#allocation4 + $0x5d0] sm:$0xf0]  ;;  %v2685_v44 = vor.u32 %v3150_v37, %v2682_v38 }
  0x50   :  { %v3082_v45 = vld [vmem:[#allocation4 + $0x2a4] sm:$0xf]  ;;  %v2410_v46 = vld [vmem:[#allocation4 + $0x2b0] sm:$0xf0]  ;;  %v2813_v48 = vor.u32 %v3182_v40, %v2810_v41 }
  0x51   :  { %1320 = vmatpush.bf16.msrb.mxu0 %v2601_v61  ;;  %1334 = vmatpush.bf16.msrb.mxu1 %v2729_v1  ;;  %v3114_v47 = vld [vmem:[#allocation4 + $0x3a4] sm:$0xf]  ;;  %v2538_v49 = vld [vmem:[#allocation4 + $0x3b0] sm:$0xf0]  ;;  %v2413_v54 = vor.u32 %v3082_v45, %v2410_v46 }
  0x52   :  { %1348 = vmatpush.bf16.msrb.mxu2 %v2093_v2  ;;  %v3146_v50 = vld [vmem:[#allocation4 + $0x4a4] sm:$0xf]  ;;  %v2666_v51 = vld [vmem:[#allocation4 + $0x4b0] sm:$0xf0]  ;;  %v2541_v55 = vor.u32 %v3114_v47, %v2538_v49 }
  0x53   :  { %1362 = vmatpush.bf16.msrb.mxu3 %v2221_v7  ;;  %v3178_v52 = vld [vmem:[#allocation4 + $0x5a4] sm:$0xf]  ;;  %v2794_v53 = vld [vmem:[#allocation4 + $0x5b0] sm:$0xf0]  ;;  %v2669_v56 = vor.u32 %v3146_v50, %v2666_v51 }
  0x54   :  { %v3078_v58 = vld [vmem:[#allocation4 + $0x284] sm:$0xf]  ;;  %v2394_v59 = vld [vmem:[#allocation4 + $0x290] sm:$0xf0]  ;;  %v2797_v61 = vor.u32 %v3178_v52, %v2794_v53 }
  0x55   :  { %1321 = vmatpush.bf16.msrb.mxu0 %v2585_v14  ;;  %1335 = vmatpush.bf16.msrb.mxu1 %v2713_v18  ;;  %v3110_v60 = vld [vmem:[#allocation4 + $0x384] sm:$0xf]  ;;  %v2522_v62 = vld [vmem:[#allocation4 + $0x390] sm:$0xf0]  ;;  %v2397_v3 = vor.u32 %v3078_v58, %v2394_v59  ;;  %v3029_v58 = vld [vmem:[#allocation4 + $0xf4] sm:$0xf0] }
  0x56   :  { %1349 = vmatpush.bf16.msrb.mxu2 %v2077_v19  ;;  %v3142_v63 = vld [vmem:[#allocation4 + $0x484] sm:$0xf]  ;;  %v2650_v0 = vld [vmem:[#allocation4 + $0x490] sm:$0xf0]  ;;  %v2525_v4 = vor.u32 %v3110_v60, %v2522_v62  ;;  %v2320_v59 = vld [vmem:[#allocation4 + $0x1e8] sm:$0xf] }
  0x57   :  { %1363 = vmatpush.bf16.msrb.mxu3 %v2205_v25  ;;  %v3174_v1 = vld [vmem:[#allocation4 + $0x584] sm:$0xf]  ;;  %v2778_v2 = vld [vmem:[#allocation4 + $0x590] sm:$0xf0]  ;;  %v2653_v5 = vor.u32 %v3142_v63, %v2650_v0  ;;  %v2448_v62 = vld [vmem:[#allocation4 + $0x2e8] sm:$0xf] }
  0x58   :  { %1322 = vmatmul.bf16.vlgmr.msrb.gmra.mxu0 %v3409_v35  ;;  %1336 = vmatmul.bf16.vlgmr.msrb.gmra.mxu1 %v3411_v39  ;;  %v3074_v7 = vld [vmem:[#allocation4 + $0x264] sm:$0xf]  ;;  %v2378_v8 = vld [vmem:[#allocation4 + $0x270] sm:$0xf0]  ;;  %v2781_v10 = vor.u32 %v3174_v1, %v2778_v2  ;;  %v3093_v63 = vld [vmem:[#allocation4 + $0x2f4] sm:$0xf0] }
  0x59   :  { %1370 = vmatpush.bf16.msra.mxu0 %v2445_v26  ;;  %1384 = vmatpush.bf16.msra.mxu1 %v2573_v29  ;;  %v3106_v9 = vld [vmem:[#allocation4 + $0x364] sm:$0xf]  ;;  %v2506_v11 = vld [vmem:[#allocation4 + $0x370] sm:$0xf0]  ;;  %v2381_v16 = vor.u32 %v3074_v7, %v2378_v8  ;;  %v2576_v2 = vld [vmem:[#allocation4 + $0x3e8] sm:$0xf]  ;;  %v2449_v8 = vor.u32 %v3093_v63, %v2448_v62 }
  0x5a   :  { %1398 = vmatpush.bf16.msra.mxu2 %v2701_v30  ;;  %1364 = vmatmul.bf16.vlgmr.msrb.gmra.mxu3 %v3400_v6  ;;  %v3138_v12 = vld [vmem:[#allocation4 + $0x464] sm:$0xf]  ;;  %v2634_v13 = vld [vmem:[#allocation4 + $0x470] sm:$0xf0]  ;;  %v2509_v17 = vor.u32 %v3106_v9, %v2506_v11  ;;  %v2176_v9 = vld [vmem:[#allocation4 + $0xc8] sm:$0xf] }
  0x5b   :  { %1412 = vmatpush.bf16.msra.mxu3 %v2829_v34  ;;  %1350 = vmatmul.bf16.vlgmr.msrb.gmra.mxu2 %v3397_v57  ;;  %v3170_v14 = vld [vmem:[#allocation4 + $0x564] sm:$0xf]  ;;  %v2762_v15 = vld [vmem:[#allocation4 + $0x570] sm:$0xf0]  ;;  %v2637_v18 = vor.u32 %v3138_v12, %v2634_v13  ;;  %v2304_v11 = vld [vmem:[#allocation4 + $0x1c8] sm:$0xf] }
  0x5c   :  { %v3070_v19 = vld [vmem:[#allocation4 + $0x244] sm:$0xf]  ;;  %v2362_v20 = vld [vmem:[#allocation4 + $0x250] sm:$0xf0]  ;;  %v2765_v24 = vor.u32 %v3170_v14, %v2762_v15  ;;  %v3057_v13 = vld [vmem:[#allocation4 + $0x1d4] sm:$0xf0] }
  0x5d   :  { %1371 = vmatpush.bf16.msra.mxu0 %v2429_v42  ;;  %1385 = vmatpush.bf16.msra.mxu1 %v2557_v43  ;;  %v3102_v21 = vld [vmem:[#allocation4 + $0x344] sm:$0xf]  ;;  %v2490_v25 = vld [vmem:[#allocation4 + $0x350] sm:$0xf0]  ;;  %v2365_v30 = vor.u32 %v3070_v19, %v2362_v20  ;;  %v2432_v14 = vld [vmem:[#allocation4 + $0x2c8] sm:$0xf]  ;;  %v2305_v19 = vor.u32 %v3057_v13, %v2304_v11 }
  0x5e   :  { %1399 = vmatpush.bf16.msra.mxu2 %v2685_v44  ;;  %v3134_v26 = vld [vmem:[#allocation4 + $0x444] sm:$0xf]  ;;  %v2618_v27 = vld [vmem:[#allocation4 + $0x450] sm:$0xf0]  ;;  %v2493_v31 = vor.u32 %v3102_v21, %v2490_v25  ;;  %v3089_v15 = vld [vmem:[#allocation4 + $0x2d4] sm:$0xf0] }
  0x5f   :  { %1413 = vmatpush.bf16.msra.mxu3 %v2813_v48  ;;  %v3166_v28 = vld [vmem:[#allocation4 + $0x544] sm:$0xf]  ;;  %v2746_v29 = vld [vmem:[#allocation4 + $0x550] sm:$0xf0]  ;;  %v2621_v32 = vor.u32 %v3134_v26, %v2618_v27  ;;  %v2433_v20 = vor.u32 %v3089_v15, %v2432_v14  ;;  %v2160_v21 = vld [vmem:[#allocation4 + $0xa8] sm:$0xf] }
  0x60   :  { %v3066_v33 = vld [vmem:[#allocation4 + $0x224] sm:$0xf]  ;;  %v2346_v34 = vld [vmem:[#allocation4 + $0x230] sm:$0xf0]  ;;  %v2749_v37 = vor.u32 %v3166_v28, %v2746_v29  ;;  %v2288_v25 = vld [vmem:[#allocation4 + $0x1a8] sm:$0xf] }
  0x61   :  { %1372 = vmatpush.bf16.msra.mxu0 %v2413_v54  ;;  %1386 = vmatpush.bf16.msra.mxu1 %v2541_v55  ;;  %v3098_v36 = vld [vmem:[#allocation4 + $0x324] sm:$0xf]  ;;  %v2474_v38 = vld [vmem:[#allocation4 + $0x330] sm:$0xf0]  ;;  %v2349_v44 = vor.u32 %v3066_v33, %v2346_v34  ;;  %v3053_v27 = vld [vmem:[#allocation4 + $0x1b4] sm:$0xf0] }
  0x62   :  { %1400 = vmatpush.bf16.msra.mxu2 %v2669_v56  ;;  %v3130_v40 = vld [vmem:[#allocation4 + $0x424] sm:$0xf]  ;;  %v2602_v41 = vld [vmem:[#allocation4 + $0x430] sm:$0xf0]  ;;  %v2477_v47 = vor.u32 %v3098_v36, %v2474_v38  ;;  %v2192_v56 = vld [vmem:[#allocation4 + $0xe8] sm:$0xf]  ;;  %v2289_v33 = vor.u32 %v3053_v27, %v2288_v25 }
  0x63   :  { %1414 = vmatpush.bf16.msra.mxu3 %v2797_v61  ;;  %v3162_v42 = vld [vmem:[#allocation4 + $0x524] sm:$0xf]  ;;  %v2730_v43 = vld [vmem:[#allocation4 + $0x530] sm:$0xf0]  ;;  %v2605_v48 = vor.u32 %v3130_v40, %v2602_v41  ;;  %v3061_v61 = vld [vmem:[#allocation4 + $0x1f4] sm:$0xf0] }
  0x64   :  { %v3062_v45 = vld [vmem:[#allocation4 + $0x204] sm:$0xf]  ;;  %v2330_v46 = vld [vmem:[#allocation4 + $0x210] sm:$0xf0]  ;;  %v2733_v52 = vor.u32 %v3162_v42, %v2730_v43  ;;  %v2321_v7 = vor.u32 %v3061_v61, %v2320_v59  ;;  %v2416_v28 = vld [vmem:[#allocation4 + $0x2a8] sm:$0xf] }
  0x65   :  { %1373 = vmatpush.bf16.msra.mxu0 %v2397_v3  ;;  %1387 = vmatpush.bf16.msra.mxu1 %v2525_v4  ;;  %v3094_v49 = vld [vmem:[#allocation4 + $0x304] sm:$0xf]  ;;  %v2458_v50 = vld [vmem:[#allocation4 + $0x310] sm:$0xf0]  ;;  %v2333_v60 = vor.u32 %v3062_v45, %v2330_v46  ;;  %v3125_v3 = vld [vmem:[#allocation4 + $0x3f4] sm:$0xf0] }
  0x66   :  { %1401 = vmatpush.bf16.msra.mxu2 %v2653_v5  ;;  %v3126_v51 = vld [vmem:[#allocation4 + $0x404] sm:$0xf]  ;;  %v2586_v53 = vld [vmem:[#allocation4 + $0x410] sm:$0xf0]  ;;  %v2461_v0 = vor.u32 %v3094_v49, %v2458_v50  ;;  %v2193_v5 = vor.u32 %v3029_v58, %v2192_v56  ;;  %v2577_v12 = vor.u32 %v3125_v3, %v2576_v2  ;;  %v3085_v29 = vld [vmem:[#allocation4 + $0x2b4] sm:$0xf0] }
  0x67   :  { %1415 = vmatpush.bf16.msra.mxu3 %v2781_v10  ;;  %v3158_v54 = vld [vmem:[#allocation4 + $0x504] sm:$0xf]  ;;  %v2714_v55 = vld [vmem:[#allocation4 + $0x510] sm:$0xf0]  ;;  %v2589_v1 = vor.u32 %v3126_v51, %v2586_v53  ;;  %v3025_v10 = vld [vmem:[#allocation4 + $0xd4] sm:$0xf0]  ;;  %v2417_v34 = vor.u32 %v3085_v29, %v2416_v28 }
  0x68   :  { %v2717_v4 = vor.u32 %v3158_v54, %v2714_v55  ;;  %v2144_v36 = vld [vmem:[#allocation4 + $0x88] sm:$0xf]  ;;  %v3049_v41 = vld [vmem:[#allocation4 + $0x194] sm:$0xf0] }
  0x69   :  { %1374 = vmatpush.bf16.msra.mxu0 %v2381_v16  ;;  %1388 = vmatpush.bf16.msra.mxu1 %v2509_v17  ;;  %v2560_v16 = vld [vmem:[#allocation4 + $0x3c8] sm:$0xf]  ;;  %v3121_v17 = vld [vmem:[#allocation4 + $0x3d4] sm:$0xf0] }
  0x6a   :  { %1402 = vmatpush.bf16.msra.mxu2 %v2637_v18  ;;  %v2177_v18 = vor.u32 %v3025_v10, %v2176_v9  ;;  %v2561_v26 = vor.u32 %v3121_v17, %v2560_v16  ;;  %v2272_v38 = vld [vmem:[#allocation4 + $0x188] sm:$0xf]  ;;  %v3081_v43 = vld [vmem:[#allocation4 + $0x294] sm:$0xf0] }
  0x6b   :  { %1416 = vmatpush.bf16.msra.mxu3 %v2765_v24  ;;  %v3021_v24 = vld [vmem:[#allocation4 + $0xb4] sm:$0xf0]  ;;  %v2400_v42 = vld [vmem:[#allocation4 + $0x288] sm:$0xf] }
  0x6c   :  { %v3113_v45 = vld [vmem:[#allocation4 + $0x394] sm:$0xf0]  ;;  %v2128_v49 = vld [vmem:[#allocation4 + $0x68] sm:$0xf] }
  0x6d   :  { %1375 = vmatpush.bf16.msra.mxu0 %v2365_v30  ;;  %1389 = vmatpush.bf16.msra.mxu1 %v2493_v31  ;;  %v2544_v30 = vld [vmem:[#allocation4 + $0x3a8] sm:$0xf]  ;;  %v3117_v31 = vld [vmem:[#allocation4 + $0x3b4] sm:$0xf0] }
  0x6e   :  { %1403 = vmatpush.bf16.msra.mxu2 %v2621_v32  ;;  %v2161_v32 = vor.u32 %v3021_v24, %v2160_v21  ;;  %v2545_v40 = vor.u32 %v3117_v31, %v2544_v30  ;;  %v3013_v50 = vld [vmem:[#allocation4 + $0x74] sm:$0xf0]  ;;  %v2256_v51 = vld [vmem:[#allocation4 + $0x168] sm:$0xf] }
  0x6f   :  { %1417 = vmatpush.bf16.msra.mxu3 %v2749_v37  ;;  %v3017_v37 = vld [vmem:[#allocation4 + $0x94] sm:$0xf0]  ;;  %v2384_v54 = vld [vmem:[#allocation4 + $0x268] sm:$0xf]  ;;  %v2129_v59 = vor.u32 %v3013_v50, %v2128_v49 }
  0x70   :  { %v2145_v46 = vor.u32 %v3017_v37, %v2144_v36  ;;  %v3045_v53 = vld [vmem:[#allocation4 + $0x174] sm:$0xf0]  ;;  %v2512_v56 = vld [vmem:[#allocation4 + $0x368] sm:$0xf] }
  0x71   :  { %1376 = vmatpush.bf16.msra.mxu0 %v2349_v44  ;;  %1390 = vmatpush.bf16.msra.mxu1 %v2477_v47  ;;  %v2528_v44 = vld [vmem:[#allocation4 + $0x388] sm:$0xf]  ;;  %v2273_v47 = vor.u32 %v3049_v41, %v2272_v38  ;;  %v3077_v55 = vld [vmem:[#allocation4 + $0x274] sm:$0xf0]  ;;  %v3027_v41 = vld [vmem:[#allocation4 + $0xec] sm:$0xf] }
  0x72   :  { %1404 = vmatpush.bf16.msra.mxu2 %v2605_v48  ;;  %v2401_v48 = vor.u32 %v3081_v43, %v2400_v42  ;;  %v3109_v58 = vld [vmem:[#allocation4 + $0x374] sm:$0xf0]  ;;  %v2385_v61 = vor.u32 %v3077_v55, %v2384_v54  ;;  %v2112_v62 = vld [vmem:[#allocation4 + $0x48] sm:$0xf]  ;;  %v2194_v42 = vld [vmem:[#allocation4 + $0xf8] sm:$0xf0] }
  0x73   :  { %1418 = vmatpush.bf16.msra.mxu3 %v2733_v52  ;;  %v2529_v52 = vor.u32 %v3113_v45, %v2528_v44  ;;  %v3009_v63 = vld [vmem:[#allocation4 + $0x54] sm:$0xf0]  ;;  %v2368_v3 = vld [vmem:[#allocation4 + $0x248] sm:$0xf]  ;;  %v3059_v45 = vld [vmem:[#allocation4 + $0x1ec] sm:$0xf]  ;;  %v2197_v50 = vor.u32 %v3027_v41, %v2194_v42 }
  0x74   :  { %v3041_v2 = vld [vmem:[#allocation4 + $0x154] sm:$0xf0]  ;;  %v2096_v11 = vld [vmem:[#allocation4 + $0x28] sm:$0xf] }
  0x75   :  { %1377 = vmatpush.bf16.msra.mxu0 %v2333_v60  ;;  %1391 = vmatpush.bf16.msra.mxu1 %v2461_v0  ;;  %v2257_v60 = vor.u32 %v3045_v53, %v2256_v51  ;;  %v2240_v0 = vld [vmem:[#allocation4 + $0x148] sm:$0xf]  ;;  %v3037_v15 = vld [vmem:[#allocation4 + $0x134] sm:$0xf0] }
  0x76   :  { %1405 = vmatpush.bf16.msra.mxu2 %v2589_v1  ;;  %v2513_v1 = vor.u32 %v3109_v58, %v2512_v56  ;;  %v2241_v9 = vor.u32 %v3041_v2, %v2240_v0  ;;  %v2224_v13 = vld [vmem:[#allocation4 + $0x128] sm:$0xf]  ;;  %v3069_v17 = vld [vmem:[#allocation4 + $0x234] sm:$0xf0]  ;;  %v3023_v56 = vld [vmem:[#allocation4 + $0xcc] sm:$0xf] }
  0x77   :  { %1419 = vmatpush.bf16.msra.mxu3 %v2717_v4  ;;  %v3073_v4 = vld [vmem:[#allocation4 + $0x254] sm:$0xf0]  ;;  %v2352_v16 = vld [vmem:[#allocation4 + $0x228] sm:$0xf]  ;;  %v2225_v25 = vor.u32 %v3037_v15, %v2224_v13  ;;  %v2178_v58 = vld [vmem:[#allocation4 + $0xd8] sm:$0xf0] }
  0x78   :  { %1378 = vmatmul.bf16.vlgmr.msra.gmra.mxu0 %v3403_v22  ;;  %1392 = vmatmul.bf16.vlgmr.msra.gmra.mxu1 %v3405_v23  ;;  %v2369_v10 = vor.u32 %v3073_v4, %v2368_v3  ;;  %v2080_v21 = vld [vmem:[#allocation4 + $0x8] sm:$0xf]  ;;  %v3001_v24 = vld [vmem:[#allocation4 + $0x14] sm:$0xf0] }
  0x79   :  { %1426 = vmatpush.bf16.msrb.mxu0 %v2193_v5  ;;  %1440 = vmatpush.bf16.msrb.mxu1 %v2321_v7  ;;  %v2496_v5 = vld [vmem:[#allocation4 + $0x348] sm:$0xf]  ;;  %v3105_v7 = vld [vmem:[#allocation4 + $0x354] sm:$0xf0]  ;;  %v2081_v38 = vor.u32 %v3001_v24, %v2080_v21  ;;  %v2274_v21 = vld [vmem:[#allocation4 + $0x198] sm:$0xf0] }
  0x7a   :  { %1454 = vmatpush.bf16.msrb.mxu2 %v2449_v8  ;;  %1420 = vmatmul.bf16.vlgmr.msra.gmra.mxu3 %v3411_v39  ;;  %v2113_v8 = vor.u32 %v3009_v63, %v2112_v62  ;;  %v2497_v14 = vor.u32 %v3105_v7, %v2496_v5  ;;  %v2208_v27 = vld [vmem:[#allocation4 + $0x108] sm:$0xf]  ;;  %v3033_v28 = vld [vmem:[#allocation4 + $0x114] sm:$0xf0]  ;;  %v2181_v63 = vor.u32 %v3023_v56, %v2178_v58  ;;  %v3019_v5 = vld [vmem:[#allocation4 + $0xac] sm:$0xf] }
  0x7b   :  { %1468 = vmatpush.bf16.msrb.mxu3 %v2577_v12  ;;  %1406 = vmatmul.bf16.vlgmr.msra.gmra.mxu2 %v3409_v35  ;;  %v3005_v12 = vld [vmem:[#allocation4 + $0x34] sm:$0xf0]  ;;  %v2336_v29 = vld [vmem:[#allocation4 + $0x208] sm:$0xf]  ;;  %v2209_v43 = vor.u32 %v3033_v28, %v2208_v27  ;;  %v2162_v7 = vld [vmem:[#allocation4 + $0xb8] sm:$0xf0] }
  0x7c   :  { %v3065_v31 = vld [vmem:[#allocation4 + $0x214] sm:$0xf0]  ;;  %v2832_v37 = vld [vmem:[#allocation4 + $0x5e8] sm:$0xf] }
  0x7d   :  { %1427 = vmatpush.bf16.msrb.mxu0 %v2177_v18  ;;  %1441 = vmatpush.bf16.msrb.mxu1 %v2305_v19  ;;  %v2480_v18 = vld [vmem:[#allocation4 + $0x328] sm:$0xf]  ;;  %v3101_v19 = vld [vmem:[#allocation4 + $0x334] sm:$0xf0]  ;;  %v2337_v44 = vor.u32 %v3065_v31, %v2336_v29 }
  0x7e   :  { %1455 = vmatpush.bf16.msrb.mxu2 %v2433_v20  ;;  %v2097_v20 = vor.u32 %v3005_v12, %v2096_v11  ;;  %v2481_v30 = vor.u32 %v3101_v19, %v2480_v18  ;;  %v3157_v36 = vld [vmem:[#allocation4 + $0x4f4] sm:$0xf0]  ;;  %v2688_v51 = vld [vmem:[#allocation4 + $0x4c8] sm:$0xf]  ;;  %v2165_v12 = vor.u32 %v3019_v5, %v2162_v7  ;;  %v3015_v18 = vld [vmem:[#allocation4 + $0x8c] sm:$0xf] }
  0x7f   :  { %1469 = vmatpush.bf16.msrb.mxu3 %v2561_v26  ;;  %v2353_v26 = vor.u32 %v3069_v17, %v2352_v16  ;;  %v2816_v53 = vld [vmem:[#allocation4 + $0x5c8] sm:$0xf]  ;;  %v3185_v55 = vld [vmem:[#allocation4 + $0x5d4] sm:$0xf0]  ;;  %v2146_v19 = vld [vmem:[#allocation4 + $0x98] sm:$0xf0] }
  0x80   :  { %v2817_v62 = vor.u32 %v3185_v55, %v2816_v53  ;;  %v2672_v0 = vld [vmem:[#allocation4 + $0x4a8] sm:$0xf]  ;;  %v3181_v4 = vld [vmem:[#allocation4 + $0x5b4] sm:$0xf0]  ;;  %v2999_v7 = vld [vmem:[#allocation4 + $0xc] sm:$0xf] }
  0x81   :  { %1428 = vmatpush.bf16.msrb.mxu0 %v2161_v32  ;;  %1442 = vmatpush.bf16.msrb.mxu1 %v2289_v33  ;;  %v2464_v32 = vld [vmem:[#allocation4 + $0x308] sm:$0xf]  ;;  %v3097_v33 = vld [vmem:[#allocation4 + $0x314] sm:$0xf0] }
  0x82   :  { %1456 = vmatpush.bf16.msrb.mxu2 %v2417_v34  ;;  %v2704_v34 = vld [vmem:[#allocation4 + $0x4e8] sm:$0xf]  ;;  %v3177_v17 = vld [vmem:[#allocation4 + $0x594] sm:$0xf0] }
  0x83   :  { %1470 = vmatpush.bf16.msrb.mxu3 %v2545_v40  ;;  %v3189_v40 = vld [vmem:[#allocation4 + $0x5f4] sm:$0xf0]  ;;  %v2800_v2 = vld [vmem:[#allocation4 + $0x5a8] sm:$0xf] }
  0x84   :  { %v2833_v49 = vor.u32 %v3189_v40, %v2832_v37  ;;  %v2801_v11 = vor.u32 %v3181_v4, %v2800_v2  ;;  %v2656_v13 = vld [vmem:[#allocation4 + $0x488] sm:$0xf]  ;;  %v3141_v28 = vld [vmem:[#allocation4 + $0x474] sm:$0xf0] }
  0x85   :  { %1429 = vmatpush.bf16.msrb.mxu0 %v2145_v46  ;;  %1443 = vmatpush.bf16.msrb.mxu1 %v2273_v47  ;;  %v2322_v46 = vld [vmem:[#allocation4 + $0x1f8] sm:$0xf0]  ;;  %v2465_v47 = vor.u32 %v3097_v33, %v2464_v32  ;;  %v2784_v15 = vld [vmem:[#allocation4 + $0x588] sm:$0xf]  ;;  %v3173_v31 = vld [vmem:[#allocation4 + $0x574] sm:$0xf0] }
  0x86   :  { %1457 = vmatpush.bf16.msrb.mxu2 %v2401_v48  ;;  %v2705_v48 = vor.u32 %v3157_v36, %v2704_v34  ;;  %v2325_v54 = vor.u32 %v3059_v45, %v2322_v46  ;;  %v2640_v27 = vld [vmem:[#allocation4 + $0x468] sm:$0xf]  ;;  %v3011_v32 = vld [vmem:[#allocation4 + $0x6c] sm:$0xf]  ;;  %v2130_v33 = vld [vmem:[#allocation4 + $0x78] sm:$0xf0] }
  0x87   :  { %1471 = vmatpush.bf16.msrb.mxu3 %v2529_v52  ;;  %v3153_v52 = vld [vmem:[#allocation4 + $0x4d4] sm:$0xf0]  ;;  %v2768_v29 = vld [vmem:[#allocation4 + $0x568] sm:$0xf]  ;;  %v3043_v34 = vld [vmem:[#allocation4 + $0x16c] sm:$0xf]  ;;  %v2641_v37 = vor.u32 %v3141_v28, %v2640_v27  ;;  %v2133_v40 = vor.u32 %v3011_v32, %v2130_v33 }
  0x88   :  { %v2258_v36 = vld [vmem:[#allocation4 + $0x178] sm:$0xf0]  ;;  %v2624_v41 = vld [vmem:[#allocation4 + $0x448] sm:$0xf]  ;;  %v3137_v42 = vld [vmem:[#allocation4 + $0x454] sm:$0xf0] }
  0x89   :  { %1430 = vmatpush.bf16.msrb.mxu0 %v2129_v59  ;;  %1444 = vmatpush.bf16.msrb.mxu1 %v2257_v60  ;;  %v3055_v59 = vld [vmem:[#allocation4 + $0x1cc] sm:$0xf]  ;;  %v2306_v60 = vld [vmem:[#allocation4 + $0x1d8] sm:$0xf0]  ;;  %v3169_v45 = vld [vmem:[#allocation4 + $0x554] sm:$0xf0] }
  0x8a   :  { %1458 = vmatpush.bf16.msrb.mxu2 %v2385_v61  ;;  %v2689_v61 = vor.u32 %v3153_v52, %v2688_v51  ;;  %v2309_v3 = vor.u32 %v3055_v59, %v2306_v60  ;;  %v3007_v46 = vld [vmem:[#allocation4 + $0x4c] sm:$0xf]  ;;  %v2608_v53 = vld [vmem:[#allocation4 + $0x428] sm:$0xf]  ;;  %v3165_v58 = vld [vmem:[#allocation4 + $0x534] sm:$0xf0] }
  0x8b   :  { %1472 = vmatpush.bf16.msrb.mxu3 %v2513_v1  ;;  %v3149_v1 = vld [vmem:[#allocation4 + $0x4b4] sm:$0xf0]  ;;  %v2736_v55 = vld [vmem:[#allocation4 + $0x528] sm:$0xf]  ;;  %v3003_v59 = vld [vmem:[#allocation4 + $0x2c] sm:$0xf] }
  0x8c   :  { %v2098_v60 = vld [vmem:[#allocation4 + $0x38] sm:$0xf0]  ;;  %v2737_v2 = vor.u32 %v3165_v58, %v2736_v55  ;;  %v2720_v4 = vld [vmem:[#allocation4 + $0x508] sm:$0xf]  ;;  %v3161_v5 = vld [vmem:[#allocation4 + $0x514] sm:$0xf0] }
  0x8d   :  { %1431 = vmatpush.bf16.msrb.mxu0 %v2113_v8  ;;  %1445 = vmatpush.bf16.msrb.mxu1 %v2241_v9  ;;  %v3051_v8 = vld [vmem:[#allocation4 + $0x1ac] sm:$0xf]  ;;  %v2290_v9 = vld [vmem:[#allocation4 + $0x1b8] sm:$0xf0] }
  0x8e   :  { %1459 = vmatpush.bf16.msrb.mxu2 %v2369_v10  ;;  %v2673_v10 = vor.u32 %v3149_v1, %v2672_v0  ;;  %v2293_v16 = vor.u32 %v3051_v8, %v2290_v9  ;;  %v2592_v0 = vld [vmem:[#allocation4 + $0x408] sm:$0xf]  ;;  %v3129_v1 = vld [vmem:[#allocation4 + $0x414] sm:$0xf0]  ;;  %v2082_v9 = vld [vmem:[#allocation4 + $0x18] sm:$0xf0] }
  0x8f   :  { %1473 = vmatpush.bf16.msrb.mxu3 %v2497_v14  ;;  %v3145_v14 = vld [vmem:[#allocation4 + $0x494] sm:$0xf0]  ;;  %v2562_v33 = vld [vmem:[#allocation4 + $0x3d8] sm:$0xf0]  ;;  %v3079_v55 = vld [vmem:[#allocation4 + $0x28c] sm:$0xf] }
  0x90   :  { %v2657_v24 = vor.u32 %v3145_v14, %v2656_v13  ;;  %v2450_v13 = vld [vmem:[#allocation4 + $0x2f8] sm:$0xf0]  ;;  %v3123_v14 = vld [vmem:[#allocation4 + $0x3ec] sm:$0xf] }
  0x91   :  { %1432 = vmatpush.bf16.msrb.mxu0 %v2097_v20  ;;  %1446 = vmatpush.bf16.msrb.mxu1 %v2225_v25  ;;  %v3047_v20 = vld [vmem:[#allocation4 + $0x18c] sm:$0xf]  ;;  %v2785_v25 = vor.u32 %v3177_v17, %v2784_v15  ;;  %v2593_v15 = vor.u32 %v3129_v1, %v2592_v0 }
  0x92   :  { %1460 = vmatpush.bf16.msrb.mxu2 %v2353_v26  ;;  %v2149_v26 = vor.u32 %v3015_v18, %v2146_v19  ;;  %v3155_v17 = vld [vmem:[#allocation4 + $0x4ec] sm:$0xf]  ;;  %v2706_v18 = vld [vmem:[#allocation4 + $0x4f8] sm:$0xf0]  ;;  %v2721_v19 = vor.u32 %v3161_v5, %v2720_v4 }
  0x93   :  { %1474 = vmatpush.bf16.msrb.mxu3 %v2481_v30  ;;  %v2277_v30 = vor.u32 %v3047_v20, %v2274_v21  ;;  %v2085_v20 = vor.u32 %v2999_v7, %v2082_v9  ;;  %v3187_v21 = vld [vmem:[#allocation4 + $0x5ec] sm:$0xf]  ;;  %v2709_v28 = vor.u32 %v3155_v17, %v2706_v18  ;;  %v2514_v7 = vld [vmem:[#allocation4 + $0x378] sm:$0xf0] }
  0x94   :  { %v3111_v58 = vld [vmem:[#allocation4 + $0x38c] sm:$0xf]  ;;  %v2642_v9 = vld [vmem:[#allocation4 + $0x478] sm:$0xf0] }
  0x95   :  { %1433 = vmatpush.bf16.msrb.mxu0 %v2081_v38  ;;  %1447 = vmatpush.bf16.msrb.mxu1 %v2209_v43  ;;  %v2769_v38 = vor.u32 %v3173_v31, %v2768_v29  ;;  %v2752_v43 = vld [vmem:[#allocation4 + $0x548] sm:$0xf]  ;;  %v3087_v29 = vld [vmem:[#allocation4 + $0x2cc] sm:$0xf] }
  0x96   :  { %1461 = vmatpush.bf16.msrb.mxu2 %v2337_v44  ;;  %v2261_v44 = vor.u32 %v3043_v34, %v2258_v36  ;;  %v2753_v51 = vor.u32 %v3169_v45, %v2752_v43  ;;  %v3119_v31 = vld [vmem:[#allocation4 + $0x3cc] sm:$0xf]  ;;  %v2690_v36 = vld [vmem:[#allocation4 + $0x4d8] sm:$0xf0] }
  0x97   :  { %1475 = vmatpush.bf16.msrb.mxu3 %v2465_v47  ;;  %v2114_v47 = vld [vmem:[#allocation4 + $0x58] sm:$0xf0]  ;;  %v3151_v34 = vld [vmem:[#allocation4 + $0x4cc] sm:$0xf] }
  0x98   :  { %1434 = vmatmul.bf16.vlgmr.msrb.gmra.mxu0 %v3397_v57  ;;  %1448 = vmatmul.bf16.vlgmr.msrb.gmra.mxu1 %v3400_v6  ;;  %v2117_v52 = vor.u32 %v3007_v46, %v2114_v47  ;;  %v3083_v43 = vld [vmem:[#allocation4 + $0x2ac] sm:$0xf]  ;;  %v2546_v47 = vld [vmem:[#allocation4 + $0x3b8] sm:$0xf0] }
  0x99   :  { %1482 = vmatpush.bf16.msra.mxu0 %v2705_v48  ;;  %1496 = vmatpush.bf16.msra.mxu1 %v2833_v49  ;;  %v3039_v48 = vld [vmem:[#allocation4 + $0x14c] sm:$0xf]  ;;  %v2242_v49 = vld [vmem:[#allocation4 + $0x158] sm:$0xf0] }
  0x9a   :  { %1510 = vmatpush.bf16.msra.mxu2 %v2197_v50  ;;  %1476 = vmatmul.bf16.vlgmr.msrb.gmra.mxu3 %v3405_v23  ;;  %v2625_v50 = vor.u32 %v3137_v42, %v2624_v41  ;;  %v2245_v56 = vor.u32 %v3039_v48, %v2242_v49  ;;  %v2565_v41 = vor.u32 %v3119_v31, %v2562_v33  ;;  %v3115_v45 = vld [vmem:[#allocation4 + $0x3ac] sm:$0xf]  ;;  %v2674_v49 = vld [vmem:[#allocation4 + $0x4b8] sm:$0xf0] }
  0x9b   :  { %1524 = vmatpush.bf16.msra.mxu3 %v2325_v54  ;;  %1462 = vmatmul.bf16.vlgmr.msrb.gmra.mxu2 %v3403_v22  ;;  %v3133_v54 = vld [vmem:[#allocation4 + $0x434] sm:$0xf0]  ;;  %v2693_v42 = vor.u32 %v3151_v34, %v2690_v36  ;;  %v3147_v48 = vld [vmem:[#allocation4 + $0x4ac] sm:$0xf]  ;;  %v2354_v31 = vld [vmem:[#allocation4 + $0x238] sm:$0xf0] }
  0x9c   :  { %v3107_v4 = vld [vmem:[#allocation4 + $0x36c] sm:$0xf]  ;;  %v2482_v34 = vld [vmem:[#allocation4 + $0x338] sm:$0xf0] }
  0x9d   :  { %1483 = vmatpush.bf16.msra.mxu0 %v2689_v61  ;;  %1497 = vmatpush.bf16.msra.mxu1 %v2817_v62  ;;  %v3035_v61 = vld [vmem:[#allocation4 + $0x12c] sm:$0xf]  ;;  %v2226_v62 = vld [vmem:[#allocation4 + $0x138] sm:$0xf0] }
  0x9e   :  { %1511 = vmatpush.bf16.msra.mxu2 %v2181_v63  ;;  %v2609_v63 = vor.u32 %v3133_v54, %v2608_v53  ;;  %v2229_v8 = vor.u32 %v3035_v61, %v2226_v62  ;;  %v2549_v53 = vor.u32 %v3115_v45, %v2546_v47  ;;  %v2677_v54 = vor.u32 %v3147_v48, %v2674_v49  ;;  %v3143_v61 = vld [vmem:[#allocation4 + $0x48c] sm:$0xf]  ;;  %v2658_v62 = vld [vmem:[#allocation4 + $0x498] sm:$0xf0] }
  0x9f   :  { %1525 = vmatpush.bf16.msra.mxu3 %v2309_v3  ;;  %v2101_v3 = vor.u32 %v3003_v59, %v2098_v60  ;;  %v2530_v60 = vld [vmem:[#allocation4 + $0x398] sm:$0xf0]  ;;  %v3103_v17 = vld [vmem:[#allocation4 + $0x34c] sm:$0xf] }
  0xa0   :  { %v2533_v1 = vor.u32 %v3111_v58, %v2530_v60  ;;  %v3131_v36 = vld [vmem:[#allocation4 + $0x42c] sm:$0xf]  ;;  %v2466_v49 = vld [vmem:[#allocation4 + $0x318] sm:$0xf0] }
  0xa1   :  { %1484 = vmatpush.bf16.msra.mxu0 %v2673_v10  ;;  %1498 = vmatpush.bf16.msra.mxu1 %v2801_v11  ;;  %v3031_v10 = vld [vmem:[#allocation4 + $0x10c] sm:$0xf]  ;;  %v2210_v11 = vld [vmem:[#allocation4 + $0x118] sm:$0xf0] }
  0xa2   :  { %1512 = vmatpush.bf16.msra.mxu2 %v2165_v12  ;;  %v3091_v12 = vld [vmem:[#allocation4 + $0x2ec] sm:$0xf]  ;;  %v3197_v60 = vld [vmem:[#allocation6 + $0x38] sm:$0xff] }
  0xa3   :  { %1526 = vmatpush.bf16.msra.mxu3 %v2293_v16  ;;  %v2578_v16 = vld [vmem:[#allocation4 + $0x3f8] sm:$0xf0]  ;;  %v3063_v45 = vld [vmem:[#allocation4 + $0x20c] sm:$0xf] }
  0xa4   :  { %v2581_v27 = vor.u32 %v3123_v14, %v2578_v16  ;;  %v2370_v16 = vld [vmem:[#allocation4 + $0x258] sm:$0xf0]  ;;  %v3095_v47 = vld [vmem:[#allocation4 + $0x30c] sm:$0xf] }
  0xa5   :  { %1485 = vmatpush.bf16.msra.mxu0 %v2657_v24  ;;  %1499 = vmatpush.bf16.msra.mxu1 %v2785_v25  ;;  %v2834_v24 = vld [vmem:[#allocation4 + $0x5f8] sm:$0xf0]  ;;  %v2213_v25 = vor.u32 %v3031_v10, %v2210_v11  ;;  %v3171_v10 = vld [vmem:[#allocation4 + $0x56c] sm:$0xf] }
  0xa6   :  { %1513 = vmatpush.bf16.msra.mxu2 %v2149_v26  ;;  %v2453_v26 = vor.u32 %v3091_v12, %v2450_v13  ;;  %v2837_v32 = vor.u32 %v3187_v21, %v2834_v24  ;;  %v2770_v11 = vld [vmem:[#allocation4 + $0x578] sm:$0xf0]  ;;  %v2517_v13 = vor.u32 %v3107_v4, %v2514_v7  ;;  %v3167_v24 = vld [vmem:[#allocation4 + $0x54c] sm:$0xf]  ;;  %v3204_v4 = vld [vmem:[#allocation6 + $0x70] sm:$0xff] }
  0xa7   :  { %1527 = vmatpush.bf16.msra.mxu3 %v2277_v30  ;;  %v2434_v30 = vld [vmem:[#allocation4 + $0x2d8] sm:$0xf0]  ;;  %v2773_v18 = vor.u32 %v3171_v10, %v2770_v11  ;;  %v3203_v10 = vld [vmem:[#allocation6 + $0x68] sm:$0xff] }
  0xa8   :  { %v2626_v21 = vld [vmem:[#allocation4 + $0x458] sm:$0xf0] }
  0xa9   :  { %1486 = vmatpush.bf16.msra.mxu0 %v2641_v37  ;;  %1500 = vmatpush.bf16.msra.mxu1 %v2769_v38  ;;  %v3183_v37 = vld [vmem:[#allocation4 + $0x5cc] sm:$0xf]  ;;  %v2818_v38 = vld [vmem:[#allocation4 + $0x5d8] sm:$0xf0] }
  0xaa   :  { %1514 = vmatpush.bf16.msra.mxu2 %v2133_v40  ;;  %v2437_v40 = vor.u32 %v3087_v29, %v2434_v30  ;;  %v2821_v46 = vor.u32 %v3183_v37, %v2818_v38  ;;  %v3067_v30 = vld [vmem:[#allocation4 + $0x22c] sm:$0xf]  ;;  %v2610_v37 = vld [vmem:[#allocation4 + $0x438] sm:$0xf0] }
  0xab   :  { %1528 = vmatpush.bf16.msra.mxu3 %v2261_v44  ;;  %v2418_v44 = vld [vmem:[#allocation4 + $0x2b8] sm:$0xf0] }
  0xad   :  { %1487 = vmatpush.bf16.msra.mxu0 %v2625_v50  ;;  %1501 = vmatpush.bf16.msra.mxu1 %v2753_v51  ;;  %v3179_v50 = vld [vmem:[#allocation4 + $0x5ac] sm:$0xf]  ;;  %v2802_v51 = vld [vmem:[#allocation4 + $0x5b8] sm:$0xf0] }
  0xae   :  { %1515 = vmatpush.bf16.msra.mxu2 %v2117_v52  ;;  %v2421_v52 = vor.u32 %v3083_v43, %v2418_v44  ;;  %v2805_v59 = vor.u32 %v3179_v50, %v2802_v51  ;;  %v2613_v44 = vor.u32 %v3131_v36, %v2610_v37  ;;  %v3127_v50 = vld [vmem:[#allocation4 + $0x40c] sm:$0xf]  ;;  %v2594_v51 = vld [vmem:[#allocation4 + $0x418] sm:$0xf0]  ;;  %v3198_v36 = vld [vmem:[#allocation6 + $0x40] sm:$0xff] }
  0xaf   :  { %1529 = vmatpush.bf16.msra.mxu3 %v2245_v56  ;;  %v2402_v56 = vld [vmem:[#allocation4 + $0x298] sm:$0xf0]  ;;  %v2597_v58 = vor.u32 %v3127_v50, %v2594_v51 }
  0xb0   :  { %v2405_v0 = vor.u32 %v3079_v55, %v2402_v56  ;;  %v2469_v56 = vor.u32 %v3095_v47, %v2466_v49 }
  0xb1   :  { %1488 = vmatpush.bf16.msra.mxu0 %v2609_v63  ;;  %1502 = vmatpush.bf16.msra.mxu1 %v2737_v2  ;;  %v3175_v63 = vld [vmem:[#allocation4 + $0x58c] sm:$0xf] }
  0xb2   :  { %1516 = vmatpush.bf16.msra.mxu2 %v2101_v3  ;;  %v3075_v2 = vld [vmem:[#allocation4 + $0x26c] sm:$0xf]  ;;  %v2386_v3 = vld [vmem:[#allocation4 + $0x278] sm:$0xf0] }
  0xb3   :  { %1530 = vmatpush.bf16.msra.mxu3 %v2229_v8  ;;  %v3139_v8 = vld [vmem:[#allocation4 + $0x46c] sm:$0xf]  ;;  %v2389_v12 = vor.u32 %v3075_v2, %v2386_v3 }
  0xb4   :  { %v2645_v14 = vor.u32 %v3139_v8, %v2642_v9 }
  0xb5   :  { %1489 = vmatpush.bf16.msra.mxu0 %v2593_v15  ;;  %1503 = vmatpush.bf16.msra.mxu1 %v2721_v19  ;;  %v3071_v15 = vld [vmem:[#allocation4 + $0x24c] sm:$0xf]  ;;  %v2498_v19 = vld [vmem:[#allocation4 + $0x358] sm:$0xf0]  ;;  %v1281_v38 = vpop.f32.mrf.mxu1 }
  0xb6   :  { %1517 = vmatpush.bf16.msra.mxu2 %v2085_v20  ;;  %v3135_v20 = vld [vmem:[#allocation4 + $0x44c] sm:$0xf] }
  0xb7   :  { %1531 = vmatpush.bf16.msra.mxu3 %v2213_v25  ;;  %v2754_v25 = vld [vmem:[#allocation4 + $0x558] sm:$0xf0] }
  0xb8   :  { %1490 = vmatmul.bf16.vlgmr.msra.gmra.mxu0 %v3409_v35  ;;  %1504 = vmatmul.bf16.vlgmr.msra.gmra.mxu1 %v3411_v39  ;;  %v2757_v33 = vor.u32 %v3167_v24, %v2754_v25  ;;  %v3200_v24 = vld [vmem:[#allocation6 + $0x50] sm:$0xff] }
  0xb9   :  { %1538 = vmatpush.bf16.msrb.mxu0 %v2453_v26  ;;  %1552 = vmatpush.bf16.msrb.mxu1 %v2581_v27  ;;  %v2373_v26 = vor.u32 %v3071_v15, %v2370_v16  ;;  %v2501_v27 = vor.u32 %v3103_v17, %v2498_v19  ;;  %v1267_v29 = vpop.f32.mrf.mxu0  ;;  %v3202_v15 = vld [vmem:[#allocation6 + $0x60] sm:$0xff]  ;;  %v3192_v19 = vld [vmem:[#allocation6 + $0x10] sm:$0xff] }
  0xba   :  { %1566 = vmatpush.bf16.msrb.mxu2 %v2709_v28  ;;  %1532 = vmatmul.bf16.vlgmr.msra.gmra.mxu3 %v3400_v6  ;;  %v2661_v6 = vor.u32 %v3143_v61, %v2658_v62  ;;  %v2629_v28 = vor.u32 %v3135_v20, %v2626_v21 }
  0xbb   :  { %1580 = vmatpush.bf16.msrb.mxu3 %v2837_v32  ;;  %1518 = vmatmul.bf16.vlgmr.msra.gmra.mxu2 %v3397_v57  ;;  %v2786_v57 = vld [vmem:[#allocation4 + $0x598] sm:$0xf0]  ;;  %v3099_v32 = vld [vmem:[#allocation4 + $0x32c] sm:$0xf] }
  0xbc   :  { %v2789_v5 = vor.u32 %v3175_v63, %v2786_v57  ;;  %v2485_v43 = vor.u32 %v3099_v32, %v2482_v34 }
  0xbd   :  { %1539 = vmatpush.bf16.msrb.mxu0 %v2437_v40  ;;  %1553 = vmatpush.bf16.msrb.mxu1 %v2565_v41  ;;  %v3163_v40 = vld [vmem:[#allocation4 + $0x52c] sm:$0xf]  ;;  %v2738_v41 = vld [vmem:[#allocation4 + $0x538] sm:$0xf0]  ;;  %v1283_v57 = vpop.f32.mrf.mxu1 }
  0xbe   :  { %1567 = vmatpush.bf16.msrb.mxu2 %v2693_v42  ;;  %v2357_v42 = vor.u32 %v3067_v30, %v2354_v31  ;;  %v2741_v48 = vor.u32 %v3163_v40, %v2738_v41  ;;  %v3190_v30 = vld [vmem:[#allocation6] sm:$0xff] }
  0xbf   :  { %1581 = vmatpush.bf16.msrb.mxu3 %v2821_v46  ;;  %v2338_v46 = vld [vmem:[#allocation4 + $0x218] sm:$0xf0] }
  0xc0   :  { %v2341_v55 = vor.u32 %v3063_v45, %v2338_v46  ;;  %v3213_v46 = vld [vmem:[#allocation6 + $0xb8] sm:$0xff] }
  0xc1   :  { %1540 = vmatpush.bf16.msrb.mxu0 %v2421_v52  ;;  %1554 = vmatpush.bf16.msrb.mxu1 %v2549_v53  ;;  %v3159_v52 = vld [vmem:[#allocation4 + $0x50c] sm:$0xf]  ;;  %v2722_v53 = vld [vmem:[#allocation4 + $0x518] sm:$0xf0]  ;;  %v1269_v63 = vpop.f32.mrf.mxu0 }
  0xc2   :  { %1568 = vmatpush.bf16.msrb.mxu2 %v2677_v54  ;;  %v3429_v54 = vld [vmem:[#allocation7] ss:$8 sm:$0xf] }
  0xc3   :  { %1582 = vmatpush.bf16.msrb.mxu3 %v2805_v59  ;;  %v2725_v59 = vor.u32 %v3159_v52, %v2722_v53  ;;  %v290_v62 = vperm.slane %v3429_v54, 0 }
  0xc5   :  { %1541 = vmatpush.bf16.msrb.mxu0 %v2405_v0  ;;  %1555 = vmatpush.bf16.msrb.mxu1 %v2533_v1  ;;  %v3205_v0 = vld [vmem:[#allocation6 + $0x78] sm:$0xff]  ;;  %v3196_v1 = vld [vmem:[#allocation6 + $0x30] sm:$0xff]  ;;  %v1268_v2 = vadd.f32 %v1267_v29, %v290_v62  ;;  %v1270_v3 = vadd.f32 %v1269_v63, %v290_v62  ;;  %v3199_v29 = vld [vmem:[#allocation6 + $0x48] sm:$0xff] }
  0xc6   :  { %1569 = vmatpush.bf16.msrb.mxu2 %v2661_v6  ;;  %v1295_v61 = vpop.f32.mrf.mxu2  ;;  %v1309_v6 = vpop.f32.mrf.mxu3 }
  0xc7   :  { %1583 = vmatpush.bf16.msrb.mxu3 %v2789_v5  ;;  %v3195_v5 = vld [vmem:[#allocation6 + $0x28] sm:$0xff]  ;;  %v1282_v7 = vadd.f32 %v1281_v38, %v1268_v2  ;;  %v1284_v8 = vadd.f32 %v1283_v57, %v1270_v3  ;;  %v291_v38 = vperm.slane %v3429_v54, 1 }
  0xc9   :  { %1542 = vmatpush.bf16.msrb.mxu0 %v2389_v12  ;;  %1556 = vmatpush.bf16.msrb.mxu1 %v2517_v13  ;;  %v3194_v12 = vld [vmem:[#allocation6 + $0x20] sm:$0xff]  ;;  %v1296_v13 = vadd.f32 %v1295_v61, %v1282_v7  ;;  %v3208_v7 = vld [vmem:[#allocation6 + $0x90] sm:$0xff] }
  0xca   :  { %1570 = vmatpush.bf16.msrb.mxu2 %v2645_v14 }
  0xcb   :  { %1584 = vmatpush.bf16.msrb.mxu3 %v2773_v18  ;;  %v1310_v16 = vadd.f32 %v1309_v6, %v1296_v13  ;;  %v3201_v18 = vld [vmem:[#allocation6 + $0x58] sm:$0xff] }
  0xcd   :  { %1543 = vmatpush.bf16.msrb.mxu0 %v2373_v26  ;;  %1557 = vmatpush.bf16.msrb.mxu1 %v2501_v27  ;;  %v3191_v26 = vld [vmem:[#allocation6 + $0x8] sm:$0xff] }
  0xce   :  { %1571 = vmatpush.bf16.msrb.mxu2 %v2629_v28  ;;  %v1297_v9 = vpop.f32.mrf.mxu2 }
  0xcf   :  { %1585 = vmatpush.bf16.msrb.mxu3 %v2757_v33  ;;  %v1298_v14 = vadd.f32 %v1297_v9, %v1284_v8  ;;  %v3207_v8 = vld [vmem:[#allocation6 + $0x88] sm:$0xff] }
  0xd1   :  { %1544 = vmatpush.bf16.msrb.mxu0 %v2357_v42  ;;  %1558 = vmatpush.bf16.msrb.mxu1 %v2485_v43 }
  0xd2   :  { %1572 = vmatpush.bf16.msrb.mxu2 %v2613_v44 }
  0xd3   :  { %1586 = vmatpush.bf16.msrb.mxu3 %v2741_v48  ;;  %v3212_v48 = vld [vmem:[#allocation6 + $0xb0] sm:$0xff] }
  0xd5   :  { %1545 = vmatpush.bf16.msrb.mxu0 %v2341_v55  ;;  %1559 = vmatpush.bf16.msrb.mxu1 %v2469_v56  ;;  %v1323_v11 = vpop.f32.mrf.mxu0  ;;  %v3211_v56 = vld [vmem:[#allocation6 + $0xa8] sm:$0xff] }
  0xd6   :  { %1573 = vmatpush.bf16.msrb.mxu2 %v2597_v58  ;;  %v1324_v20 = vadd.f32 %v1323_v11, %v1310_v16  ;;  %v3206_v11 = vld [vmem:[#allocation6 + $0x80] sm:$0xff] }
  0xd7   :  { %1587 = vmatpush.bf16.msrb.mxu3 %v2725_v59 }
  0xd8   :  { %1546 = vmatmul.bf16.vlgmr.msrb.gmra.mxu0 %v3403_v22  ;;  %1560 = vmatmul.bf16.vlgmr.msrb.gmra.mxu1 %v3405_v23  ;;  %v1337_v22 = vpop.f32.mrf.mxu1  ;;  %v1311_v23 = vpop.f32.mrf.mxu3 }
  0xd9   :  { %1863 = vmatpush.bf16.msra.mxu0 %v3197_v60  ;;  %1877 = vmatpush.bf16.msra.mxu1 %v3205_v0  ;;  %v1338_v27 = vadd.f32 %v1337_v22, %v1324_v20  ;;  %v3210_v60 = vld [vmem:[#allocation6 + $0xa0] sm:$0xff]  ;;  %v3221_v22 = vld [vmem:[#allocation6 + $0xf8] sm:$0xff]  ;;  %v3219_v20 = vld [vmem:[#allocation6 + $0xe8] sm:$0xff] }
  0xda   :  { %1574 = vmatmul.bf16.vlgmr.msrb.gmra.mxu2 %v3409_v35  ;;  %1588 = vmatmul.bf16.vlgmr.msrb.gmra.mxu3 %v3411_v39  ;;  %v3193_v35 = vld [vmem:[#allocation6 + $0x18] sm:$0xff]  ;;  %v1312_v39 = vadd.f32 %v1311_v23, %v1298_v14 }
  0xdb   :  { %v1594_v32 = vmax.f32 %v1338_v27, 0.0  ;;  %1891 = vmatpush.bf16.msra.mxu2 %v3213_v46  ;;  %1905 = vmatpush.bf16.msra.mxu3 %v3221_v22  ;;  %v3226_v22 = vld [vmem:[#allocation6 + $0x120] sm:$0xff] }
  0xdd   :  { %1864 = vmatpush.bf16.msra.mxu0 %v3196_v1  ;;  %1878 = vmatpush.bf16.msra.mxu1 %v3204_v4  ;;  %v1325_v17 = vpop.f32.mrf.mxu0 }
  0xde   :  { %v1326_v21 = vadd.f32 %v1325_v17, %v1312_v39  ;;  %v1351_v31 = vpop.f32.mrf.mxu2 }
  0xdf   :  { %v1352_v40 = vadd.f32 %v1351_v31, %v291_v38  ;;  %1892 = vmatpush.bf16.msra.mxu2 %v3212_v48  ;;  %v293_v48 = vperm.slane %v3429_v54, 3 }
  0xe0   :  { %v1339_v25 = vpop.f32.mrf.mxu1  ;;  %v1365_v34 = vpop.f32.mrf.mxu3 }
  0xe1   :  { %1865 = vmatpush.bf16.msra.mxu0 %v3195_v5  ;;  %1879 = vmatpush.bf16.msra.mxu1 %v3203_v10  ;;  %v1340_v28 = vadd.f32 %v1339_v25, %v1326_v21  ;;  %v1366_v43 = vadd.f32 %v1365_v34, %v1352_v40  ;;  %v3209_v5 = vld [vmem:[#allocation6 + $0x98] sm:$0xff] }
  0xe3   :  { %v1598_v33 = vmax.f32 %v1340_v28, 0.0  ;;  %1893 = vmatpush.bf16.msra.mxu2 %v3211_v56 }
  0xe5   :  { %1866 = vmatpush.bf16.msra.mxu0 %v3194_v12  ;;  %1880 = vmatpush.bf16.msra.mxu1 %v3202_v15  ;;  %v1602_v37 = vpack.c.bf16 %v1598_v33, %v1594_v32  ;;  %v292_v12 = vperm.slane %v3429_v54, 2  ;;  %v3220_v15 = vld [vmem:[#allocation6 + $0xf0] sm:$0xff]  ;;  %v3217_v32 = vld [vmem:[#allocation6 + $0xd8] sm:$0xff] }
  0xe6   :  { %v1353_v41 = vpop.f32.mrf.mxu2  ;;  %1906 = vmatpush.bf16.msra.mxu3 %v3220_v15  ;;  %v3223_v15 = vld [vmem:[#allocation6 + $0x108] sm:$0xff] }
  0xe7   :  { %v1354_v47 = vadd.f32 %v1353_v41, %v291_v38  ;;  %1894 = vmatpush.bf16.msra.mxu2 %v3210_v60  ;;  %v3216_v38 = vld [vmem:[#allocation6 + $0xd0] sm:$0xff] }
  0xe8   :  { %v1367_v42 = vpop.f32.mrf.mxu3 }
  0xe9   :  { %1867 = vmatpush.bf16.msra.mxu0 %v3193_v35  ;;  %1881 = vmatpush.bf16.msra.mxu1 %v3201_v18  ;;  %v1368_v50 = vadd.f32 %v1367_v42, %v1354_v47 }
  0xea   :  { %1907 = vmatpush.bf16.msra.mxu3 %v3219_v20 }
  0xeb   :  { %1895 = vmatpush.bf16.msra.mxu2 %v3209_v5 }
  0xed   :  { %1868 = vmatpush.bf16.msra.mxu0 %v3192_v19  ;;  %1882 = vmatpush.bf16.msra.mxu1 %v3200_v24 }
  0xef   :  { %1896 = vmatpush.bf16.msra.mxu2 %v3208_v7 }
  0xf1   :  { %1869 = vmatpush.bf16.msra.mxu0 %v3191_v26  ;;  %1883 = vmatpush.bf16.msra.mxu1 %v3199_v29  ;;  %v3218_v26 = vld [vmem:[#allocation6 + $0xe0] sm:$0xff] }
  0xf2   :  { %1908 = vmatpush.bf16.msra.mxu3 %v3218_v26 }
  0xf3   :  { %1897 = vmatpush.bf16.msra.mxu2 %v3207_v8 }
  0xf5   :  { %1870 = vmatpush.bf16.msra.mxu0 %v3190_v30  ;;  %1884 = vmatpush.bf16.msra.mxu1 %v3198_v36  ;;  %v1379_v44 = vpop.f32.mrf.mxu0  ;;  %v1393_v45 = vpop.f32.mrf.mxu1 }
  0xf6   :  { %v1380_v49 = vadd.f32 %v1379_v44, %v1366_v43  ;;  %1909 = vmatpush.bf16.msra.mxu3 %v3217_v32  ;;  %v3215_v43 = vld [vmem:[#allocation6 + $0xc8] sm:$0xff] }
  0xf7   :  { %1898 = vmatpush.bf16.msra.mxu2 %v3206_v11  ;;  %v3228_v11 = vld [vmem:[#allocation6 + $0x130] sm:$0xff] }
  0xf8   :  { %1871 = vmatmul.bf16.vlgmr.msra.gmra.mxu0 %v1602_v37  ;;  %v1394_v52 = vadd.f32 %v1393_v45, %v1380_v49  ;;  %v3214_v45 = vld [vmem:[#allocation6 + $0xc0] sm:$0xff] }
  0xfa   :  { %1910 = vmatpush.bf16.msra.mxu3 %v3216_v38 }
  0xfd   :  { %v1381_v53 = vpop.f32.mrf.mxu0  ;;  %v1421_v55 = vpop.f32.mrf.mxu3 }
  0xfe   :  { %v1407_v51 = vpop.f32.mrf.mxu2  ;;  %v1382_v58 = vadd.f32 %v1381_v53, %v1368_v50  ;;  %v1395_v59 = vpop.f32.mrf.mxu1  ;;  %1911 = vmatpush.bf16.msra.mxu3 %v3215_v43 }
  0xff   :  { %v1408_v61 = vadd.f32 %v1407_v51, %v1394_v52 }
 0x100   :  { %v1396_v62 = vadd.f32 %v1395_v59, %v1382_v58 }
 0x101   :  { %v1422_v57 = vadd.f32 %v1421_v55, %v1408_v61 }
 0x102   :  { %1912 = vmatpush.bf16.msra.mxu3 %v3214_v45 }
 0x103   :  { %v1595_v2 = vmax.f32 %v1422_v57, 0.0 }
 0x105   :  { %v1423_v1 = vpop.f32.mrf.mxu3 }
 0x106   :  { %v1409_v63 = vpop.f32.mrf.mxu2 }
 0x107   :  { %v1410_v0 = vadd.f32 %v1409_v63, %v1396_v62 }
 0x109   :  { %v1424_v6 = vadd.f32 %v1423_v1, %v1410_v0 }
 0x10b   :  { %v1599_v3 = vmax.f32 %v1424_v6, 0.0 }
 0x10d   :  { %v1603_v4 = vpack.c.bf16 %v1599_v3, %v1595_v2 }
 0x10f   :  { %1885 = vmatmul.bf16.vlgmr.msra.gmra.mxu1 %v1603_v4 }
 0x115   :  { %v1435_v9 = vpop.f32.mrf.mxu0  ;;  %v1449_v10 = vpop.f32.mrf.mxu1 }
 0x116   :  { %v1436_v13 = vadd.f32 %v1435_v9, %v292_v12 }
 0x118   :  { %v1450_v35 = vadd.f32 %v1449_v10, %v1436_v13  ;;  %v3229_v10 = vld [vmem:[#allocation6 + $0x138] sm:$0xff] }
 0x119   :  { %1987 = vmatpush.bf16.msrb.mxu0 %v3229_v10  ;;  %v3225_v13 = vld [vmem:[#allocation6 + $0x118] sm:$0xff] }
 0x11d   :  { %v1437_v23 = vpop.f32.mrf.mxu0  ;;  %v1451_v16 = vpop.f32.mrf.mxu1  ;;  %1988 = vmatpush.bf16.msrb.mxu0 %v3228_v11 }
 0x11e   :  { %v1463_v14 = vpop.f32.mrf.mxu2  ;;  %v1477_v39 = vpop.f32.mrf.mxu3  ;;  %v1438_v17 = vadd.f32 %v1437_v23, %v292_v12  ;;  %v3227_v12 = vld [vmem:[#allocation6 + $0x128] sm:$0xff]  ;;  %v3222_v23 = vld [vmem:[#allocation6 + $0x100] sm:$0xff] }
 0x11f   :  { %v1464_v18 = vadd.f32 %v1463_v14, %v1450_v35  ;;  %v3224_v14 = vld [vmem:[#allocation6 + $0x110] sm:$0xff] }
 0x120   :  { %v1452_v19 = vadd.f32 %v1451_v16, %v1438_v17  ;;  %v1670_v17 = vld [vmem:[#allocation7 + $0x1] ss:$0 sm:$0xff] }
 0x121   :  { %v1478_v24 = vadd.f32 %v1477_v39, %v1464_v18  ;;  %1989 = vmatpush.bf16.msrb.mxu0 %v3227_v12 }
 0x125   :  { %1990 = vmatpush.bf16.msrb.mxu0 %v3226_v22 }
 0x126   :  { %v1465_v21 = vpop.f32.mrf.mxu2  ;;  %v1479_v29 = vpop.f32.mrf.mxu3 }
 0x127   :  { %v1466_v28 = vadd.f32 %v1465_v21, %v1452_v19 }
 0x129   :  { %v1480_v31 = vadd.f32 %v1479_v29, %v1466_v28  ;;  %1991 = vmatpush.bf16.msrb.mxu0 %v3225_v13 }
 0x12d   :  { %1992 = vmatpush.bf16.msrb.mxu0 %v3224_v14 }
 0x131   :  { %1993 = vmatpush.bf16.msrb.mxu0 %v3223_v15 }
 0x135   :  { %v1491_v25 = vpop.f32.mrf.mxu0  ;;  %v1505_v27 = vpop.f32.mrf.mxu1  ;;  %1994 = vmatpush.bf16.msrb.mxu0 %v3222_v23 }
 0x136   :  { %v1492_v30 = vadd.f32 %v1491_v25, %v1478_v24 }
 0x138   :  { %v1506_v33 = vadd.f32 %v1505_v27, %v1492_v30 }
 0x13a   :  { %v1596_v40 = vmax.f32 %v1506_v33, 0.0 }
 0x13d   :  { %v1493_v34 = vpop.f32.mrf.mxu0  ;;  %v1507_v37 = vpop.f32.mrf.mxu1 }
 0x13e   :  { %v1494_v36 = vadd.f32 %v1493_v34, %v1480_v31  ;;  %v1519_v46 = vpop.f32.mrf.mxu2  ;;  %v1533_v47 = vpop.f32.mrf.mxu3 }
 0x13f   :  { %v1520_v50 = vadd.f32 %v1519_v46, %v293_v48 }
 0x140   :  { %v1508_v41 = vadd.f32 %v1507_v37, %v1494_v36  ;;  %v1938_v37 = vld [vmem:[#allocation7 + $0x2] ss:$0 sm:$0xff] }
 0x141   :  { %v1534_v55 = vadd.f32 %v1533_v47, %v1520_v50 }
 0x142   :  { %v1600_v42 = vmax.f32 %v1508_v41, 0.0 }
 0x144   :  { %v1604_v44 = vpack.c.bf16 %v1600_v42, %v1596_v40 }
 0x146   :  { %1899 = vmatmul.bf16.vlgmr.msra.gmra.mxu2 %v1604_v44  ;;  %v1521_v49 = vpop.f32.mrf.mxu2  ;;  %v1535_v51 = vpop.f32.mrf.mxu3 }
 0x147   :  { %v1522_v56 = vadd.f32 %v1521_v49, %v293_v48 }
 0x149   :  { %v1536_v60 = vadd.f32 %v1535_v51, %v1522_v56 }
 0x155   :  { %v1547_v52 = vpop.f32.mrf.mxu0  ;;  %v1561_v53 = vpop.f32.mrf.mxu1 }
 0x156   :  { %v1548_v58 = vadd.f32 %v1547_v52, %v1534_v55 }
 0x158   :  { %v1562_v63 = vadd.f32 %v1561_v53, %v1548_v58 }
 0x15d   :  { %v1575_v59 = vpop.f32.mrf.mxu2  ;;  %v1589_v61 = vpop.f32.mrf.mxu3 }
 0x15e   :  { %v1549_v62 = vpop.f32.mrf.mxu0  ;;  %v1576_v0 = vadd.f32 %v1575_v59, %v1562_v63  ;;  %v1563_v1 = vpop.f32.mrf.mxu1 }
 0x15f   :  { %v1550_v57 = vadd.f32 %v1549_v62, %v1536_v60 }
 0x160   :  { %v1590_v3 = vadd.f32 %v1589_v61, %v1576_v0 }
 0x161   :  { %v1564_v6 = vadd.f32 %v1563_v1, %v1550_v57 }
 0x162   :  { %v1597_v7 = vmax.f32 %v1590_v3, 0.0 }
 0x165   :  { %v1577_v2 = vpop.f32.mrf.mxu2  ;;  %v1591_v4 = vpop.f32.mrf.mxu3 }
 0x166   :  { %v1578_v54 = vadd.f32 %v1577_v2, %v1564_v6 }
 0x168   :  { %v1592_v5 = vadd.f32 %v1591_v4, %v1578_v54 }
 0x16a   :  { %v1601_v8 = vmax.f32 %v1592_v5, 0.0 }
 0x16c   :  { %v1605_v9 = vpack.c.bf16 %v1601_v8, %v1597_v7 }
 0x16e   :  { %1913 = vmatmul.bf16.vlgmr.msra.gmra.mxu3 %v1605_v9 }
 0x175   :  { %v1872_v35 = vpop.f32.mrf.mxu0 }
 0x176   :  { %v1873_v20 = vadd.f32 %v1872_v35, %v1670_v17 }
 0x17d   :  { %v1874_v18 = vpop.f32.mrf.mxu0 }
 0x17e   :  { %v1875_v24 = vadd.f32 %v1874_v18, %v1670_v17 }
 0x18c   :  { %v1886_v16 = vpop.f32.mrf.mxu1 }
 0x18d   :  { %v1887_v25 = vadd.f32 %v1886_v16, %v1873_v20 }
 0x194   :  { %v1888_v21 = vpop.f32.mrf.mxu1 }
 0x195   :  { %v1889_v27 = vadd.f32 %v1888_v21, %v1875_v24 }
 0x1c9   :  { %v1900_v39 = vpop.f32.mrf.mxu2 }
 0x1ca   :  { %v1901_v28 = vadd.f32 %v1900_v39, %v1887_v25 }
 0x1d1   :  { %v1902_v26 = vpop.f32.mrf.mxu2 }
 0x1d2   :  { %v1903_v29 = vadd.f32 %v1902_v26, %v1889_v27 }
 0x1f1   :  { %v1914_v19 = vpop.f32.mrf.mxu3 }
 0x1f2   :  { %v1915_v30 = vadd.f32 %v1914_v19, %v1901_v28 }
 0x1f4   :  { %v1919_v33 = vmax.f32 %v1915_v30, 0.0 }
 0x1f9   :  { %v1916_v31 = vpop.f32.mrf.mxu3 }
 0x1fa   :  { %v1917_v32 = vadd.f32 %v1916_v31, %v1903_v29 }
 0x1fc   :  { %v1920_v34 = vmax.f32 %v1917_v32, 0.0 }
 0x1fe   :  { %v1921_v36 = vpack.c.bf16 %v1920_v34, %v1919_v33 }
 0x200   :  { %1995 = vmatmul.bf16.vlgmr.msrb.gmra.mxu0 %v1921_v36 }
 0x27d   :  { %v1996_v38 = vpop.f32.mrf.mxu0 }
 0x27e   :  { %v1997_v40 = vadd.f32 %v1996_v38, %v1938_v37 }
 0x280   :  { %2001 = vmax.xlane.f32.xlu0 %v1997_v40 }
 0x285   :  { %v1998_v41 = vpop.f32.mrf.mxu0 }
 0x286   :  { %v1999_v42 = vadd.f32 %v1998_v41, %v1938_v37 }
 0x288   :  { %2003 = vmax.xlane.f32.xlu0 %v1999_v42 }
 0x2f3   :  { %v2002_v43 = vpop.xlane.xlu0 %2001 }
 0x2f4   :  { %v2005_v44 = vsub.f32 %v1997_v40, %v2002_v43 }
 0x2f6   :  { %v2007_v45 = vmul.f32 1.442695, %v2005_v44 }
 0x2f8   :  { %3240 = vpow2.f32 %v2007_v45 }
 0x2fb   :  { %v2004_v46 = vpop.xlane.xlu0 %2003 }
 0x2fc   :  { %v2006_v47 = vsub.f32 %v1999_v42, %v2004_v46 }
 0x2fe   :  { %v3241_v48 = vpop.eup %3240  ;;  %v2009_v49 = vmul.f32 1.442695, %v2006_v47 }
 0x2ff   :  { %2011 = vadd.xlane.f32.xlu1 %v3241_v48 }
 0x300   :  { %3242 = vpow2.f32 %v2009_v49 }
 0x306   :  { %v3243_v50 = vpop.eup %3242 }
 0x307   :  { %2013 = vadd.xlane.f32.xlu1 %v3243_v50 }
 0x372   :  { %v2012_v51 = vpop.xlane.xlu1 %2011 }
 0x373   :  { %3244 = vlog2.f32 %v2012_v51 }
 0x379   :  { %v3245_v52 = vpop.eup %3244 }
 0x37a   :  { %v2016_v53 = vmul.f32 0.6931472, %v3245_v52  ;;  %v2014_v55 = vpop.xlane.xlu1 %2013 }
 0x37b   :  { %3246 = vlog2.f32 %v2014_v55 }
 0x37c   :  { %v2019_v56 = vadd.f32 %v2016_v53, %v2002_v43 }
 0x37e   :  { %v2021_v58 = vsub.f32 %v1997_v40, %v2019_v56 }
 0x380   :  { %2024 = vst.msk [vmem:[#allocation9] sm:$0xff] %vm2023_vm0, %v2021_v58 }
 0x381   :  { %v3247_v59 = vpop.eup %3246 }
 0x387   :  { %v2056_v60 = vld [vmem:[#allocation9] sm:$0xff] }
 0x388   :  { %2057 = vst [vmem:[%s3446_s4] sm:$0xff] %v2056_v60 }
 0x389   :  { %2063 = vsyncpa [#allocation3], 1 }
 0x38a   :  { %2064 = vsyncpa [#allocation5], 1 }
 0x38b   :  { %2065 = vsyncpa [#allocation8], 1 }

</bundles_post_ra>
